<compile_context>
chip_gen: v7x
topology: tpu7x:2x2x1
jax: 0.10.0
libtpu: 0.0.40
codegen_flags: <defaults>
</compile_context>

<pallas_src>
import numpy as np

import jax
import jax.numpy as jnp
from jax.experimental import pallas as pl
from jax.experimental.pallas import tpu as pltpu

# ------------------------- configuration (synthetic) -------------------------
FEAT_DIM = 16                    # config.input_feature_dim
N_DIR_DIMS = 3
N_X_DIMS = 3
SH_DEGREE = 4                    # dir_encoding_config -> 16 dims
SH_DIM = SH_DEGREE ** 2
N_FREQ = 6                       # xyz_encoding_config -> 3 * 2 * 6 = 36 dims
PE_DIM = N_X_DIMS * 2 * N_FREQ
HIDDEN = 64                      # mlp_network_config.n_neurons
N_OUT = 3
D_IN = FEAT_DIM + SH_DIM + PE_DIM    # logical n_input_dims = 68

# ---- kernel-internal (transposed, padded) layout ----
TRIG_REAL = N_FREQ * N_X_DIMS        # 18 real trig rows
TRIG_ROWS = 24                       # padded to 24 so every concat offset is 8-aligned
SIN_OFF = FEAT_DIM + SH_DIM          # 32
COS_OFF = SIN_OFF + TRIG_ROWS        # 56
D_IN_PAD = COS_OFF + TRIG_ROWS       # 80   (zero weight columns for the pad rows)
N_OUT_PAD = 8                        # lane-dense output slab (rows 3..7 are padding)
MAX_TILE_N = 1024                    # rows (lanes) per grid step

# frequency column: row 3k+j -> 2^k * pi (k < N_FREQ), padding rows -> 0
_FREQ_NP = np.zeros((TRIG_ROWS, 1), np.float32)
for _k in range(N_FREQ):
    _FREQ_NP[3 * _k:3 * _k + 3, 0] = (2.0 ** _k) * np.pi


def _sh_deg4_t(d):
    """Real spherical harmonics up to l=3 (16 terms). d: (3, T) in [-1,1] -> (16, T)."""
    x = d[0:1, :]
    y = d[1:2, :]
    z = d[2:3, :]
    xx, yy, zz = x * x, y * y, z * z
    xy, yz, xz = x * y, y * z, x * z
    terms = [
        0.28209479177387814 * jnp.ones_like(x),
        -0.48860251190291987 * y,
        0.48860251190291987 * z,
        -0.48860251190291987 * x,
        1.0925484305920792 * xy,
        -1.0925484305920792 * yz,
        0.94617469575756008 * zz - 0.31539156525252005,
        -1.0925484305920792 * xz,
        0.54627421529603959 * (xx - yy),
        -0.59004358992664352 * y * (3.0 * xx - yy),
        2.8906114426405538 * xy * z,
        0.45704579946446572 * y * (1.0 - 5.0 * zz),
        0.3731763325901154 * z * (5.0 * zz - 3.0),
        0.45704579946446572 * x * (1.0 - 5.0 * zz),
        1.4453057213202769 * z * (xx - yy),
        -0.59004358992664352 * x * (xx - 3.0 * yy),
    ]
    return jnp.concatenate(terms, axis=0)  # (16, T)


def radiance_kernel(feat_ref, dirs_ref, pos_ref, freq_ref,
                    w1_ref, b1_ref, w2_ref, b2_ref, w3_ref, b3_ref,
                    out_ref):
    feat = feat_ref[...]                 # (16, T) f32
    dirs = dirs_ref[...]                 # (3, T)  f32
    pos = pos_ref[...]                   # (3, T)  f32

    # module: (dirs+1)/2 then encoder [0,1]->[-1,1] remap == identity -> use dirs.
    sh = _sh_deg4_t(dirs)                # (16, T)

    # Frequency encoding, batched: one sin + one cos over all freqs x dims.
    # pos replicated to 24 rows; padding rows multiply by freq 0 (their weight
    # columns in w1 are zero, so cos(0)=1 there is harmless).
    pos24 = jnp.concatenate([pos] * (TRIG_ROWS // N_X_DIMS), axis=0)   # (24, T)
    ang = pos24 * freq_ref[...]                                        # (24, T)
    s = jnp.sin(ang)
    c = jnp.cos(ang)

    # channels-on-sublanes input slab: feat@0, sh@16, sin@32, cos@56 -> (80, T).
    # All offsets are multiples of 8, so the concat is sublane-group aligned.
    inp = jnp.concatenate([feat, sh, s, c], axis=0)                    # (80, T) f32

    # MLP (f32 operands, f32 accumulation / biases):  h = W @ x + b
    h = jnp.dot(w1_ref[...], inp, preferred_element_type=jnp.float32) + b1_ref[...]
    h = jnp.maximum(h, 0.0)
    h = jnp.dot(w2_ref[...], h, preferred_element_type=jnp.float32) + b2_ref[...]
    h = jnp.maximum(h, 0.0)
    o = jnp.dot(w3_ref[...], h, preferred_element_type=jnp.float32) + b3_ref[...]  # (8, T)

    # color_activation = 'sigmoid'; lane-dense (8, T) store.
    out_ref[...] = jax.nn.sigmoid(o).astype(out_ref.dtype)


def _round_up(x, m):
    return ((x + m - 1) // m) * m


@jax.jit
def volume_radiance_enc(features, dirs, pos, params):
    """features: (..., FEAT_DIM), dirs/pos: (..., 3). Returns (..., 3) float32."""
    lead_shape = features.shape[:-1]
    featT = features.reshape(-1, FEAT_DIM).astype(jnp.float32).T     # (16, n)
    dirsT = dirs.reshape(-1, N_DIR_DIMS).astype(jnp.float32).T       # (3, n)
    posT = pos.reshape(-1, N_X_DIMS).astype(jnp.float32).T           # (3, n)

    n = featT.shape[1]
    tile = min(MAX_TILE_N, _round_up(n, 128))
    n_pad = _round_up(n, tile)
    pad = n_pad - n
    if pad:
        featT = jnp.pad(featT, ((0, 0), (0, pad)))
        dirsT = jnp.pad(dirsT, ((0, 0), (0, pad)))
        posT = jnp.pad(posT, ((0, 0), (0, pad)))

    w1, b1, w2, b2, w3, b3 = params

    # ---- one-time weight repack: transpose, reorder/zero-pad K, keep f32 ----
    w1t = w1.T.astype(jnp.float32)                                    # (HIDDEN, 68)
    # logical PE column order is per-freq interleaved [sin_xyz, cos_xyz]; the
    # kernel slab is [all sins | pad | all coss | pad], so gather accordingly.
    sin_cols = jnp.array(
        [FEAT_DIM + SH_DIM + 6 * k + j for k in range(N_FREQ) for j in range(3)],
        jnp.int32)
    cos_cols = sin_cols + 3
    w1p = jnp.zeros((HIDDEN, D_IN_PAD), jnp.float32)
    w1p = w1p.at[:, :FEAT_DIM + SH_DIM].set(w1t[:, :FEAT_DIM + SH_DIM])
    w1p = w1p.at[:, SIN_OFF:SIN_OFF + TRIG_REAL].set(jnp.take(w1t, sin_cols, axis=1))
    w1p = w1p.at[:, COS_OFF:COS_OFF + TRIG_REAL].set(jnp.take(w1t, cos_cols, axis=1))
    w1k = w1p                                                         # (64, 80) f32
    b1k = b1.reshape(HIDDEN, 1).astype(jnp.float32)
    w2k = w2.T.astype(jnp.float32)                                    # (64, 64)
    b2k = b2.reshape(HIDDEN, 1).astype(jnp.float32)
    w3k = (jnp.zeros((N_OUT_PAD, HIDDEN), jnp.float32)
           .at[:N_OUT].set(w3.T.astype(jnp.float32)))                 # (8, 64)
    b3k = jnp.zeros((N_OUT_PAD, 1), jnp.float32).at[:N_OUT, 0].set(b3.reshape(N_OUT))
    freq_col = jnp.asarray(_FREQ_NP)                                  # (24, 1)

    grid = (n_pad // tile,)
    row_spec = lambda c: pl.BlockSpec((c, tile), lambda i: (0, i))
    full_spec = lambda r, c: pl.BlockSpec((r, c), lambda i: (0, 0))

    out = pl.pallas_call(
        radiance_kernel,
        out_shape=jax.ShapeDtypeStruct((N_OUT_PAD, n_pad), jnp.float32),
        grid_spec=pltpu.PrefetchScalarGridSpec(
            num_scalar_prefetch=0,
            grid=grid,
            in_specs=[
                row_spec(FEAT_DIM),              # features   (16, n_pad)
                row_spec(N_DIR_DIMS),            # dirs       (3, n_pad)
                row_spec(N_X_DIMS),              # pos        (3, n_pad)
                full_spec(TRIG_ROWS, 1),         # freq col   (24, 1)
                full_spec(HIDDEN, D_IN_PAD),     # w1
                full_spec(HIDDEN, 1),            # b1
                full_spec(HIDDEN, HIDDEN),       # w2
                full_spec(HIDDEN, 1),            # b2
                full_spec(N_OUT_PAD, HIDDEN),    # w3 (padded to 8 rows)
                full_spec(N_OUT_PAD, 1),         # b3 (padded to 8 rows)
            ],
            out_specs=pl.BlockSpec((N_OUT_PAD, tile), lambda i: (0, i)),
        ),
        compiler_params=pltpu.CompilerParams(
            dimension_semantics=("parallel",)),
    )(featT, dirsT, posT, freq_col, w1k, b1k, w2k, b2k, w3k, b3k)

    color = out[:N_OUT, :n].T.reshape(*lead_shape, N_OUT)
    return color


def init_params(key):
    """Deterministic MLP parameter init (He-style normal), logical (in, out) layout."""
    k1, k2, k3 = jax.random.split(key, 3)
    w1 = jax.random.normal(k1, (D_IN, HIDDEN), jnp.float32) * (2.0 / D_IN) ** 0.5
    b1 = jnp.zeros((1, HIDDEN), jnp.float32)
    w2 = jax.random.normal(k2, (HIDDEN, HIDDEN), jnp.float32) * (2.0 / HIDDEN) ** 0.5
    b2 = jnp.zeros((1, HIDDEN), jnp.float32)
    w3 = jax.random.normal(k3, (HIDDEN, N_OUT), jnp.float32) * (2.0 / HIDDEN) ** 0.5
    b3 = jnp.zeros((1, N_OUT), jnp.float32)
    return (w1, b1, w2, b2, w3, b3)


def _reference(features, dirs, pos, params):
    """Pure-JAX (f32) reference with the original row-major layout."""
    w1, b1, w2, b2, w3, b3 = params
    feat2 = features.reshape(-1, FEAT_DIM).astype(jnp.float32)
    dirs2 = dirs.reshape(-1, N_DIR_DIMS).astype(jnp.float32)
    pos2 = pos.reshape(-1, N_X_DIMS).astype(jnp.float32)
    d = ((dirs2 + 1.0) * 0.5) * 2.0 - 1.0
    sh = _sh_deg4_t(d.T).T
    pe = jnp.concatenate(
        sum([[jnp.sin(pos2 * (2.0 ** k) * jnp.pi),
              jnp.cos(pos2 * (2.0 ** k) * jnp.pi)] for k in range(N_FREQ)], []),
        axis=-1)
    inp = jnp.concatenate([feat2, sh, pe], axis=-1)
    h = jnp.maximum(inp @ w1 + b1, 0.0)
    h = jnp.maximum(h @ w2 + b2, 0.0)
    o = h @ w3 + b3
    return jax.nn.sigmoid(o).reshape(*features.shape[:-1], N_OUT)


if __name__ == "__main__":
    key = jax.random.PRNGKey(0)
    kf, kd, kp, kw = jax.random.split(key, 4)

    B, S = 2, 96  # 2 rays x 96 samples -> N = 192 points (tests the padding path)
    features = jax.random.normal(kf, (B, S, FEAT_DIM), jnp.float32)
    dirs = jax.random.uniform(kd, (B, S, N_DIR_DIMS), jnp.float32, -1.0, 1.0)
    dirs = dirs / jnp.linalg.norm(dirs, axis=-1, keepdims=True)
    pos = jax.random.uniform(kp, (B, S, N_X_DIMS), jnp.float32, -1.0, 1.0)

    params = init_params(kw)

    color = volume_radiance_enc(features, dirs, pos, params)
    color = jax.block_until_ready(color)

    assert color.shape == (B, S, N_OUT), color.shape
    assert color.dtype == jnp.float32

    ref = _reference(features, dirs, pos, params)
    # f32 everywhere now -> tight tolerance vs the f32 reference.
    err = float(jnp.max(jnp.abs(color - ref)))
    assert err < 2e-3, err

    print("KERNEL_OK")
</pallas_src>

<mosaic_0001>
module attributes {stable_mosaic.version = 11 : i64} {
  func.func @radiance_kernel(%arg0: i32, %arg1: memref<16x256xf32, #tpu.memory_space<vmem>>, %arg2: memref<3x256xf32, #tpu.memory_space<vmem>>, %arg3: memref<3x256xf32, #tpu.memory_space<vmem>>, %arg4: memref<24x1xf32, #tpu.memory_space<vmem>>, %arg5: memref<64x80xf32, #tpu.memory_space<vmem>>, %arg6: memref<64x1xf32, #tpu.memory_space<vmem>>, %arg7: memref<64x64xf32, #tpu.memory_space<vmem>>, %arg8: memref<64x1xf32, #tpu.memory_space<vmem>>, %arg9: memref<8x64xf32, #tpu.memory_space<vmem>>, %arg10: memref<8x1xf32, #tpu.memory_space<vmem>>, %arg11: memref<8x256xf32, #tpu.memory_space<vmem>>) attributes {dimension_semantics = [#tpu.dimension_semantics<parallel>], iteration_bounds = array<i64: 1>, scalar_prefetch = 0 : i64, scratch_operands = 0 : i64, tpu.core_type = #tpu.core_type<tc>, window_params = [{transform_indices = @transform_0, window_bounds = array<i64: 16, 256>}, {transform_indices = @transform_1, window_bounds = array<i64: 3, 256>}, {transform_indices = @transform_2, window_bounds = array<i64: 3, 256>}, {pipeline_mode = #tpu.pipeline_mode<synchronous>, transform_indices = @transform_3, window_bounds = array<i64: 24, 1>}, {pipeline_mode = #tpu.pipeline_mode<synchronous>, transform_indices = @transform_4, window_bounds = array<i64: 64, 80>}, {pipeline_mode = #tpu.pipeline_mode<synchronous>, transform_indices = @transform_5, window_bounds = array<i64: 64, 1>}, {pipeline_mode = #tpu.pipeline_mode<synchronous>, transform_indices = @transform_6, window_bounds = array<i64: 64, 64>}, {pipeline_mode = #tpu.pipeline_mode<synchronous>, transform_indices = @transform_7, window_bounds = array<i64: 64, 1>}, {pipeline_mode = #tpu.pipeline_mode<synchronous>, transform_indices = @transform_8, window_bounds = array<i64: 8, 64>}, {pipeline_mode = #tpu.pipeline_mode<synchronous>, transform_indices = @transform_9, window_bounds = array<i64: 8, 1>}, {transform_indices = @transform_10, window_bounds = array<i64: 8, 256>}]} {
    %c0 = arith.constant 0 : index
    %c0_0 = arith.constant 0 : index
    %0 = vector.load %arg1[%c0, %c0_0] : memref<16x256xf32, #tpu.memory_space<vmem>>, vector<16x256xf32>
    %c0_1 = arith.constant 0 : index
    %c0_2 = arith.constant 0 : index
    %1 = vector.load %arg2[%c0_1, %c0_2] : memref<3x256xf32, #tpu.memory_space<vmem>>, vector<3x256xf32>
    %c0_3 = arith.constant 0 : index
    %c0_4 = arith.constant 0 : index
    %2 = vector.load %arg3[%c0_3, %c0_4] : memref<3x256xf32, #tpu.memory_space<vmem>>, vector<3x256xf32>
    %3 = vector.extract_strided_slice %1 {offsets = [0, 0], sizes = [1, 256], strides = [1, 1]} : vector<3x256xf32> to vector<1x256xf32>
    %4 = vector.extract_strided_slice %1 {offsets = [1, 0], sizes = [1, 256], strides = [1, 1]} : vector<3x256xf32> to vector<1x256xf32>
    %5 = vector.extract_strided_slice %1 {offsets = [2, 0], sizes = [1, 256], strides = [1, 1]} : vector<3x256xf32> to vector<1x256xf32>
    %6 = arith.mulf %3, %3 : vector<1x256xf32>
    %7 = arith.mulf %4, %4 : vector<1x256xf32>
    %8 = arith.mulf %5, %5 : vector<1x256xf32>
    %9 = arith.mulf %3, %4 : vector<1x256xf32>
    %10 = arith.mulf %4, %5 : vector<1x256xf32>
    %11 = arith.mulf %3, %5 : vector<1x256xf32>
    %cst = arith.constant 1.000000e+00 : f32
    %12 = vector.broadcast %cst : f32 to vector<1x256xf32>
    %cst_5 = arith.constant 0.282094806 : f32
    %13 = vector.broadcast %cst_5 : f32 to vector<1x256xf32>
    %14 = arith.mulf %13, %12 : vector<1x256xf32>
    %cst_6 = arith.constant -0.488602519 : f32
    %15 = vector.broadcast %cst_6 : f32 to vector<1x256xf32>
    %16 = arith.mulf %15, %4 : vector<1x256xf32>
    %cst_7 = arith.constant 0.488602519 : f32
    %17 = vector.broadcast %cst_7 : f32 to vector<1x256xf32>
    %18 = arith.mulf %17, %5 : vector<1x256xf32>
    %cst_8 = arith.constant -0.488602519 : f32
    %19 = vector.broadcast %cst_8 : f32 to vector<1x256xf32>
    %20 = arith.mulf %19, %3 : vector<1x256xf32>
    %cst_9 = arith.constant 1.09254849 : f32
    %21 = vector.broadcast %cst_9 : f32 to vector<1x256xf32>
    %22 = arith.mulf %21, %9 : vector<1x256xf32>
    %cst_10 = arith.constant -1.09254849 : f32
    %23 = vector.broadcast %cst_10 : f32 to vector<1x256xf32>
    %24 = arith.mulf %23, %10 : vector<1x256xf32>
    %cst_11 = arith.constant 0.946174681 : f32
    %25 = vector.broadcast %cst_11 : f32 to vector<1x256xf32>
    %26 = arith.mulf %25, %8 : vector<1x256xf32>
    %cst_12 = arith.constant 0.31539157 : f32
    %27 = vector.broadcast %cst_12 : f32 to vector<1x256xf32>
    %28 = arith.subf %26, %27 : vector<1x256xf32>
    %cst_13 = arith.constant -1.09254849 : f32
    %29 = vector.broadcast %cst_13 : f32 to vector<1x256xf32>
    %30 = arith.mulf %29, %11 : vector<1x256xf32>
    %31 = arith.subf %6, %7 : vector<1x256xf32>
    %cst_14 = arith.constant 0.546274245 : f32
    %32 = vector.broadcast %cst_14 : f32 to vector<1x256xf32>
    %33 = arith.mulf %32, %31 : vector<1x256xf32>
    %cst_15 = arith.constant -0.590043604 : f32
    %34 = vector.broadcast %cst_15 : f32 to vector<1x256xf32>
    %35 = arith.mulf %34, %4 : vector<1x256xf32>
    %cst_16 = arith.constant 3.000000e+00 : f32
    %36 = vector.broadcast %cst_16 : f32 to vector<1x256xf32>
    %37 = arith.mulf %36, %6 : vector<1x256xf32>
    %38 = arith.subf %37, %7 : vector<1x256xf32>
    %39 = arith.mulf %35, %38 : vector<1x256xf32>
    %cst_17 = arith.constant 2.89061141 : f32
    %40 = vector.broadcast %cst_17 : f32 to vector<1x256xf32>
    %41 = arith.mulf %40, %9 : vector<1x256xf32>
    %42 = arith.mulf %41, %5 : vector<1x256xf32>
    %cst_18 = arith.constant 0.457045794 : f32
    %43 = vector.broadcast %cst_18 : f32 to vector<1x256xf32>
    %44 = arith.mulf %43, %4 : vector<1x256xf32>
    %cst_19 = arith.constant 5.000000e+00 : f32
    %45 = vector.broadcast %cst_19 : f32 to vector<1x256xf32>
    %46 = arith.mulf %45, %8 : vector<1x256xf32>
    %cst_20 = arith.constant 1.000000e+00 : f32
    %47 = vector.broadcast %cst_20 : f32 to vector<1x256xf32>
    %48 = arith.subf %47, %46 : vector<1x256xf32>
    %49 = arith.mulf %44, %48 : vector<1x256xf32>
    %cst_21 = arith.constant 0.373176336 : f32
    %50 = vector.broadcast %cst_21 : f32 to vector<1x256xf32>
    %51 = arith.mulf %50, %5 : vector<1x256xf32>
    %cst_22 = arith.constant 5.000000e+00 : f32
    %52 = vector.broadcast %cst_22 : f32 to vector<1x256xf32>
    %53 = arith.mulf %52, %8 : vector<1x256xf32>
    %cst_23 = arith.constant 3.000000e+00 : f32
    %54 = vector.broadcast %cst_23 : f32 to vector<1x256xf32>
    %55 = arith.subf %53, %54 : vector<1x256xf32>
    %56 = arith.mulf %51, %55 : vector<1x256xf32>
    %cst_24 = arith.constant 0.457045794 : f32
    %57 = vector.broadcast %cst_24 : f32 to vector<1x256xf32>
    %58 = arith.mulf %57, %3 : vector<1x256xf32>
    %cst_25 = arith.constant 5.000000e+00 : f32
    %59 = vector.broadcast %cst_25 : f32 to vector<1x256xf32>
    %60 = arith.mulf %59, %8 : vector<1x256xf32>
    %cst_26 = arith.constant 1.000000e+00 : f32
    %61 = vector.broadcast %cst_26 : f32 to vector<1x256xf32>
    %62 = arith.subf %61, %60 : vector<1x256xf32>
    %63 = arith.mulf %58, %62 : vector<1x256xf32>
    %cst_27 = arith.constant 1.44530571 : f32
    %64 = vector.broadcast %cst_27 : f32 to vector<1x256xf32>
    %65 = arith.mulf %64, %5 : vector<1x256xf32>
    %66 = arith.subf %6, %7 : vector<1x256xf32>
    %67 = arith.mulf %65, %66 : vector<1x256xf32>
    %cst_28 = arith.constant -0.590043604 : f32
    %68 = vector.broadcast %cst_28 : f32 to vector<1x256xf32>
    %69 = arith.mulf %68, %3 : vector<1x256xf32>
    %cst_29 = arith.constant 3.000000e+00 : f32
    %70 = vector.broadcast %cst_29 : f32 to vector<1x256xf32>
    %71 = arith.mulf %70, %7 : vector<1x256xf32>
    %72 = arith.subf %6, %71 : vector<1x256xf32>
    %73 = arith.mulf %69, %72 : vector<1x256xf32>
    %74 = tpu.concatenate %14, %16, %18, %20, %22, %24, %28, %30, %33, %39, %42, %49, %56, %63, %67, %73 in 0 : vector<1x256xf32>, vector<1x256xf32>, vector<1x256xf32>, vector<1x256xf32>, vector<1x256xf32>, vector<1x256xf32>, vector<1x256xf32>, vector<1x256xf32>, vector<1x256xf32>, vector<1x256xf32>, vector<1x256xf32>, vector<1x256xf32>, vector<1x256xf32>, vector<1x256xf32>, vector<1x256xf32>, vector<1x256xf32> -> vector<16x256xf32>
    %75 = tpu.concatenate %2, %2, %2, %2, %2, %2, %2, %2 in 0 : vector<3x256xf32>, vector<3x256xf32>, vector<3x256xf32>, vector<3x256xf32>, vector<3x256xf32>, vector<3x256xf32>, vector<3x256xf32>, vector<3x256xf32> -> vector<24x256xf32>
    %c0_30 = arith.constant 0 : index
    %c0_31 = arith.constant 0 : index
    %76 = vector.load %arg4[%c0_30, %c0_31] : memref<24x1xf32, #tpu.memory_space<vmem>>, vector<24x1xf32>
    %77 = vector.broadcast %76 : vector<24x1xf32> to vector<24x256xf32>
    %78 = arith.mulf %75, %77 : vector<24x256xf32>
    %79 = math.sin %78 : vector<24x256xf32>
    %80 = math.cos %78 : vector<24x256xf32>
    %81 = tpu.concatenate %0, %74, %79, %80 in 0 : vector<16x256xf32>, vector<16x256xf32>, vector<24x256xf32>, vector<24x256xf32> -> vector<80x256xf32>
    %c0_32 = arith.constant 0 : index
    %c0_33 = arith.constant 0 : index
    %82 = vector.load %arg5[%c0_32, %c0_33] : memref<64x80xf32, #tpu.memory_space<vmem>>, vector<64x80xf32>
    %cst_34 = arith.constant dense<0.000000e+00> : vector<64x256xf32>
    %83 = tpu.matmul %82, %81, %cst_34 {dimension_numbers = #tpu.dot_dimension_numbers<[1], [0], [0], [1], [0, 0, 1, 1], [], []>} : vector<64x80xf32>, vector<80x256xf32>, vector<64x256xf32> -> vector<64x256xf32>
    %c0_35 = arith.constant 0 : index
    %c0_36 = arith.constant 0 : index
    %84 = vector.load %arg6[%c0_35, %c0_36] : memref<64x1xf32, #tpu.memory_space<vmem>>, vector<64x1xf32>
    %85 = vector.broadcast %84 : vector<64x1xf32> to vector<64x256xf32>
    %86 = arith.addf %83, %85 : vector<64x256xf32>
    %cst_37 = arith.constant 0.000000e+00 : f32
    %87 = vector.broadcast %cst_37 : f32 to vector<64x256xf32>
    %88 = arith.maximumf %86, %87 : vector<64x256xf32>
    %c0_38 = arith.constant 0 : index
    %c0_39 = arith.constant 0 : index
    %89 = vector.load %arg7[%c0_38, %c0_39] : memref<64x64xf32, #tpu.memory_space<vmem>>, vector<64x64xf32>
    %cst_40 = arith.constant dense<0.000000e+00> : vector<64x256xf32>
    %90 = tpu.matmul %89, %88, %cst_40 {dimension_numbers = #tpu.dot_dimension_numbers<[1], [0], [0], [1], [0, 0, 1, 1], [], []>} : vector<64x64xf32>, vector<64x256xf32>, vector<64x256xf32> -> vector<64x256xf32>
    %c0_41 = arith.constant 0 : index
    %c0_42 = arith.constant 0 : index
    %91 = vector.load %arg8[%c0_41, %c0_42] : memref<64x1xf32, #tpu.memory_space<vmem>>, vector<64x1xf32>
    %92 = vector.broadcast %91 : vector<64x1xf32> to vector<64x256xf32>
    %93 = arith.addf %90, %92 : vector<64x256xf32>
    %cst_43 = arith.constant 0.000000e+00 : f32
    %94 = vector.broadcast %cst_43 : f32 to vector<64x256xf32>
    %95 = arith.maximumf %93, %94 : vector<64x256xf32>
    %c0_44 = arith.constant 0 : index
    %c0_45 = arith.constant 0 : index
    %96 = vector.load %arg9[%c0_44, %c0_45] : memref<8x64xf32, #tpu.memory_space<vmem>>, vector<8x64xf32>
    %cst_46 = arith.constant dense<0.000000e+00> : vector<8x256xf32>
    %97 = tpu.matmul %96, %95, %cst_46 {dimension_numbers = #tpu.dot_dimension_numbers<[1], [0], [0], [1], [0, 0, 1, 1], [], []>} : vector<8x64xf32>, vector<64x256xf32>, vector<8x256xf32> -> vector<8x256xf32>
    %c0_47 = arith.constant 0 : index
    %c0_48 = arith.constant 0 : index
    %98 = vector.load %arg10[%c0_47, %c0_48] : memref<8x1xf32, #tpu.memory_space<vmem>>, vector<8x1xf32>
    %99 = vector.broadcast %98 : vector<8x1xf32> to vector<8x256xf32>
    %100 = arith.addf %97, %99 : vector<8x256xf32>
    %101 = arith.negf %100 : vector<8x256xf32>
    %102 = math.exp %101 : vector<8x256xf32>
    %cst_49 = arith.constant 1.000000e+00 : f32
    %103 = vector.broadcast %cst_49 : f32 to vector<8x256xf32>
    %104 = arith.addf %103, %102 : vector<8x256xf32>
    %105 = arith.divf %103, %104 : vector<8x256xf32>
    %c0_50 = arith.constant 0 : index
    %c0_51 = arith.constant 0 : index
    %106 = vector.load %arg11[%c0_50, %c0_51] : memref<8x256xf32, #tpu.memory_space<vmem>>, vector<8x256xf32>
    tpu.vector_store %arg11[%c0_50, %c0_51], %105 {strides = array<i32>} : memref<8x256xf32, #tpu.memory_space<vmem>>, vector<8x256xf32>,
    return
  }
  func.func @transform_0(%arg0: i32) -> (i32, i32) {
    %c0_i32 = arith.constant 0 : i32
    %c0_i32_0 = arith.constant 0 : i32
    return %c0_i32, %arg0 : i32, i32
  }
  func.func @transform_1(%arg0: i32) -> (i32, i32) {
    %c0_i32 = arith.constant 0 : i32
    %c0_i32_0 = arith.constant 0 : i32
    return %c0_i32, %arg0 : i32, i32
  }
  func.func @transform_2(%arg0: i32) -> (i32, i32) {
    %c0_i32 = arith.constant 0 : i32
    %c0_i32_0 = arith.constant 0 : i32
    return %c0_i32, %arg0 : i32, i32
  }
  func.func @transform_3(%arg0: i32) -> (i32, i32) {
    %c0_i32 = arith.constant 0 : i32
    %c0_i32_0 = arith.constant 0 : i32
    %c0_i32_1 = arith.constant 0 : i32
    return %c0_i32, %c0_i32_0 : i32, i32
  }
  func.func @transform_4(%arg0: i32) -> (i32, i32) {
    %c0_i32 = arith.constant 0 : i32
    %c0_i32_0 = arith.constant 0 : i32
    %c0_i32_1 = arith.constant 0 : i32
    return %c0_i32, %c0_i32_0 : i32, i32
  }
  func.func @transform_5(%arg0: i32) -> (i32, i32) {
    %c0_i32 = arith.constant 0 : i32
    %c0_i32_0 = arith.constant 0 : i32
    %c0_i32_1 = arith.constant 0 : i32
    return %c0_i32, %c0_i32_0 : i32, i32
  }
  func.func @transform_6(%arg0: i32) -> (i32, i32) {
    %c0_i32 = arith.constant 0 : i32
    %c0_i32_0 = arith.constant 0 : i32
    %c0_i32_1 = arith.constant 0 : i32
    return %c0_i32, %c0_i32_0 : i32, i32
  }
  func.func @transform_7(%arg0: i32) -> (i32, i32) {
    %c0_i32 = arith.constant 0 : i32
    %c0_i32_0 = arith.constant 0 : i32
    %c0_i32_1 = arith.constant 0 : i32
    return %c0_i32, %c0_i32_0 : i32, i32
  }
  func.func @transform_8(%arg0: i32) -> (i32, i32) {
    %c0_i32 = arith.constant 0 : i32
    %c0_i32_0 = arith.constant 0 : i32
    %c0_i32_1 = arith.constant 0 : i32
    return %c0_i32, %c0_i32_0 : i32, i32
  }
  func.func @transform_9(%arg0: i32) -> (i32, i32) {
    %c0_i32 = arith.constant 0 : i32
    %c0_i32_0 = arith.constant 0 : i32
    %c0_i32_1 = arith.constant 0 : i32
    return %c0_i32, %c0_i32_0 : i32, i32
  }
  func.func @transform_10(%arg0: i32) -> (i32, i32) {
    %c0_i32 = arith.constant 0 : i32
    %c0_i32_0 = arith.constant 0 : i32
    return %c0_i32, %arg0 : i32, i32
  }
}

</mosaic_0001>

<bundles_post_ra>
// kernel: volume_radiance_enc.1
= control target key start
LH: loop header
LB: loop body
LE: loop exit
PB: predicated region body
PF: predicated region fallthrough
CT: control target
= control target key end

     0   :  { %v2319_v0 = vmov 0   ;;  %vm266_vm0 = vcmask 1041408   ;;  %vm269_vm1 = vcmask 1042432   ;;  %vm275_vm2 = vcmask 1044480   ;;  %s3335_s3 = inlined_call_operand.vmem [shape: f32[24,1], index: 3, kind: input, shape index: {}]   ;;  %s3336_s5 = inlined_call_operand.vmem [shape: f32[64,1], index: 5, kind: input, shape index: {}]   ;;  %s3337_s7 = inlined_call_operand.vmem [shape: f32[64,1], index: 7, kind: input, shape index: {}]   ;;  %s3338_s9 = inlined_call_operand.vmem [shape: f32[8,1], index: 9, kind: input, shape index: {}]   ;;  %s3339_s2 = inlined_call_operand.vmem [shape: f32[3,256], index: 2, kind: input, shape index: {}]   ;;  %s3340_s0 = inlined_call_operand.vmem [shape: f32[16,256], index: 0, kind: input, shape index: {}]   ;;  %s3341_s1 = inlined_call_operand.vmem [shape: f32[3,256], index: 1, kind: input, shape index: {}]   ;;  %s3342_s4 = inlined_call_operand.vmem [shape: f32[64,80], index: 4, kind: input, shape index: {}]   ;;  %s3343_s6 = inlined_call_operand.vmem [shape: f32[64,64], index: 6, kind: input, shape index: {}]   ;;  %s3344_s8 = inlined_call_operand.vmem [shape: f32[8,64], index: 8, kind: input, shape index: {}]   ;;  %s3345_s10 = inlined_call_operand.vmem [shape: f32[8,256], index: 10, kind: output, shape index: {}]  }
   0x1   :  { %2284 = vset.pattern.permute.xlu1 %v2319_v0  ;;  %2283 = vset.pattern.permute.xlu0 %v2319_v0  ;;  %v343_v1 = vld [vmem:[%s3335_s3 + $0x10] sm:$0xff]  ;;  %v341_v2 = vld [vmem:[%s3335_s3] sm:$0xff]  ;;  %v342_v4 = vld [vmem:[%s3335_s3 + $0x8] sm:$0xff]  ;;  %vm278_vm3 = vcmask 1045504   ;;  %vm263_vm4 = vcmask 1040384   ;;  %vm272_vm5 = vcmask 1043456  }
   0x2   :  { %356 = vperm.xlu1 %2284, %v343_v1   ;;  %346 = vperm.xlu0 %2283, %v341_v2   ;;  %v1615_v3 = vld [vmem:[%s3336_s5] sm:$0xff]  ;;  %v1617_v5 = vld [vmem:[%s3336_s5 + $0x10] sm:$0xff]  ;;  %v1616_v6 = vld [vmem:[%s3336_s5 + $0x8] sm:$0xff]  ;;  %vm281_vm6 = vcmask 1046528  }
   0x3   :  { %v1619_v7 = vld [vmem:[%s3336_s5 + $0x20] sm:$0xff]  ;;  %v1618_v8 = vld [vmem:[%s3336_s5 + $0x18] sm:$0xff]  ;;  %v1621_v9 = vld [vmem:[%s3336_s5 + $0x30] sm:$0xff] }
   0x4   :  { %v1620_v10 = vld [vmem:[%s3336_s5 + $0x28] sm:$0xff]  ;;  %v1825_v11 = vld [vmem:[%s3337_s7] sm:$0xff]  ;;  %v1622_v12 = vld [vmem:[%s3336_s5 + $0x38] sm:$0xff] }
   0x5   :  { %v1827_v13 = vld [vmem:[%s3337_s7 + $0x10] sm:$0xff]  ;;  %v1826_v14 = vld [vmem:[%s3337_s7 + $0x8] sm:$0xff]  ;;  %v1829_v15 = vld [vmem:[%s3337_s7 + $0x20] sm:$0xff] }
   0x6   :  { %1625 = vperm.xlu1 %2284, %v1615_v3   ;;  %351 = vperm.xlu0 %2283, %v342_v4   ;;  %v1828_v16 = vld [vmem:[%s3337_s7 + $0x18] sm:$0xff]  ;;  %v1831_v17 = vld [vmem:[%s3337_s7 + $0x30] sm:$0xff]  ;;  %v1830_v18 = vld [vmem:[%s3337_s7 + $0x28] sm:$0xff] }
   0x7   :  { %v2028_v19 = vld [vmem:[%s3338_s9] sm:$0xff]  ;;  %v1832_v20 = vld [vmem:[%s3337_s7 + $0x38] sm:$0xff] }
   0x8   :  { %v2445_v21 = vld [vmem:[%s3339_s2] sm:$0x77] }
   0x9   :  { %v2449_v22 = vcombine.high %v2445_v21, %v2445_v21  ;;  %v315_v23 = vrot.slane %v2445_v21, 1  ;;  %v319_v24 = vrot.slane %v2445_v21, 6  ;;  %v301_v27 = vrot.slane %v2445_v21, 5 }
   0xa   :  { %1635 = vperm.xlu1 %2284, %v1617_v5   ;;  %1630 = vperm.xlu0 %2283, %v1616_v6   ;;  %v323_v28 = vrot.slane %v2445_v21, 3  ;;  %v305_v31 = vrot.slane %v2445_v21, 2  ;;  %v309_v45 = vrot.slane %v2445_v21, 7  ;;  %v313_v52 = vcombine.low %v2445_v21, %v2445_v21 }
   0xb   :  { %v316_v25 = vrot.slane %v2449_v22, 1  ;;  %v320_v26 = vrot.slane %v2449_v22, 6  ;;  %v324_v29 = vrot.slane %v2449_v22, 3  ;;  %v337_v30 = vsel %vm266_vm0, %v315_v23, %v319_v24 }
   0xc   :  { %v302_v33 = vrot.slane %v2449_v22, 5  ;;  %v327_v34 = vsel %vm269_vm1, %v2445_v21, %v301_v27  ;;  %v339_v35 = vsel %vm275_vm2, %v337_v30, %v323_v28  ;;  %v306_v37 = vrot.slane %v2449_v22, 2 }
   0xd   :  { %v338_v32 = vsel %vm266_vm0, %v316_v25, %v320_v26  ;;  %v329_v38 = vsel %vm278_vm3, %v327_v34, %v305_v31  ;;  %v310_v50 = vrot.slane %v2449_v22, 7  ;;  %v331_v56 = vsel %vm263_vm4, %v305_v31, %v309_v45 }
   0xe   :  { %1645 = vperm.xlu1 %2284, %v1619_v7   ;;  %1640 = vperm.xlu0 %2283, %v1618_v8   ;;  %v340_v36 = vsel %vm275_vm2, %v338_v32, %v324_v29  ;;  %v328_v39 = vsel %vm269_vm1, %v2449_v22, %v302_v33  ;;  %v333_v3 = vsel %vm272_vm5, %v331_v56, %v313_v52  ;;  %v2321_v28 = vmov 2475754826  }
   0xf   :  { %v330_v46 = vsel %vm278_vm3, %v328_v39, %v306_v37  ;;  %v332_v63 = vsel %vm263_vm4, %v306_v37, %v310_v50  ;;  %v2322_v30 = vmov 2131351028   ;;  %v2323_v32 = vmov 2102212464  }
  0x10   :  { %v2324_v34 = vmov 920167782   ;;  %v2325_v45 = vmov 1326507024  }
  0x12   :  { %1655 = vperm.xlu1 %2284, %v1621_v9   ;;  %1650 = vperm.xlu0 %2283, %v1620_v10   ;;  %v2505_v9 = vsel %vm272_vm5, %v332_v63, %v2445_v21 }
  0x16   :  { %1835 = vperm.xlu1 %2284, %v1825_v11   ;;  %1660 = vperm.xlu0 %2283, %v1622_v12   ;;  %v2509_v12 = vsel %vm281_vm6, %v333_v3, %v315_v23  ;;  %v2320_v23 = vmov 683565275  }
  0x1a   :  { %1845 = vperm.xlu1 %2284, %v1827_v13   ;;  %1840 = vperm.xlu0 %2283, %v1826_v14  }
  0x1e   :  { %1855 = vperm.xlu1 %2284, %v1829_v15   ;;  %1850 = vperm.xlu0 %2283, %v1828_v16  }
  0x22   :  { %1865 = vperm.xlu1 %2284, %v1831_v17   ;;  %1860 = vperm.xlu0 %2283, %v1830_v18  }
  0x26   :  { %2031 = vperm.xlu1 %2284, %v2028_v19   ;;  %1870 = vperm.xlu0 %2283, %v1832_v20  }
  0x81   :  { %v357_v40 = vpop.permute.xlu1 %356  ;;  %v347_v41 = vpop.permute.xlu0 %346 }
  0x82   :  { %v2472_v42 = vmul.f32 %v357_v40, %v339_v35  ;;  %v2474_v43 = vmul.f32 %v357_v40, %v340_v36  ;;  %v2476_v44 = vmul.f32 %v347_v41, %v329_v38  ;;  %v2493_v59 = vmul.f32 %v347_v41, %v330_v46 }
  0x84   :  { %3360 = vst [vmem:[#allocation2_spill] sm:$0xff] %v2472_v42  ;;  %v781_v47 = vand.u32 2147483647, %v2472_v42  ;;  %v784_v48 = vand.u32 2139095040, %v2472_v42  ;;  %v885_v49 = vand.u32 2147483647, %v2474_v43 }
  0x85   :  { %v888_v51 = vand.u32 2139095040, %v2474_v43  ;;  %v368_v55 = vand.u32 2139095040, %v2476_v44  ;;  %v365_v60 = vand.u32 2147483647, %v2476_v44  ;;  %v472_v8 = vand.u32 2139095040, %v2493_v59 }
  0x86   :  { %v785_v53 = vshrl.u32 %v784_v48, 23  ;;  %v788_v54 = vand.u32 8388607, %v781_v47  ;;  %v892_v58 = vand.u32 8388607, %v885_v49 }
  0x87   :  { %v889_v57 = vshrl.u32 %v888_v51, 23  ;;  %v369_v62 = vshrl.u32 %v368_v55, 23  ;;  %v2500_v7 = vand.u32 8388607, %v365_v60  ;;  %v469_v11 = vand.u32 2147483647, %v2493_v59 }
  0x88   :  { %v2148_v61 = vadd.s32 4294967169, %v785_v53  ;;  %v789_v0 = vor.u32 8388608, %v788_v54  ;;  %v893_v2 = vor.u32 8388608, %v892_v58  ;;  %v2518_v24 = vshrl.u32 %v472_v8, 23 }
  0x89   :  { %v2152_v1 = vadd.s32 4294967169, %v889_v57  ;;  %v2132_v5 = vadd.s32 4294967169, %v369_v62  ;;  %v373_v21 = vor.u32 8388608, %v2500_v7 }
  0x8a   :  { %v791_v4 = vadd.s32 1, %v2148_v61  ;;  %v2511_v14 = vshll.u32 %v789_v0, 8  ;;  %v2513_v15 = vshll.u32 %v893_v2, 8 }
  0x8b   :  { %v895_v6 = vadd.s32 1, %v2152_v1  ;;  %v375_v10 = vadd.s32 1, %v2132_v5 }
  0x8c   :  { %vm792_vm7 = vcmp.gt.s32.totalorder %v791_v4, 0 }
  0x8d   :  { %v793_v13 = vsel %vm792_vm7, %v791_v4, 0  ;;  %vm896_vm8 = vcmp.gt.s32.totalorder %v895_v6, 0  ;;  %vm376_vm9 = vcmp.gt.s32.totalorder %v375_v10, 0 }
  0x8e   :  { %v794_v16 = vshrl.u32 %v793_v13, 5  ;;  %v795_v17 = vand.u32 31, %v793_v13  ;;  %v897_v18 = vsel %vm896_vm8, %v895_v6, 0  ;;  %v2526_v36 = vsel %vm376_vm9, %v375_v10, 0 }
  0x8f   :  { %v2515_v19 = vshrl.u32 %v897_v18, 5  ;;  %v899_v20 = vand.u32 31, %v897_v18 }
  0x90   :  { %v796_v26 = vsub.s32 32, %v795_v17  ;;  %v798_v27 = vshll.u32 %v2320_v23, %v795_v17  ;;  %v801_v29 = vshll.u32 %v2321_v28, %v795_v17  ;;  %v804_v31 = vshll.u32 %v2322_v30, %v795_v17 }
  0x91   :  { %v807_v33 = vshll.u32 %v2323_v32, %v795_v17  ;;  %v810_v35 = vshll.u32 %v2324_v34, %v795_v17  ;;  %vm813_vm10 = vcmp.lt.s32.totalorder %v794_v16, 1  ;;  %vm815_vm11 = vcmp.lt.s32.totalorder %v794_v16, 3 }
  0x92   :  { %v797_v37 = vshrl.u32 %v2320_v23, %v796_v26  ;;  %v799_v38 = vshrl.u32 %v2321_v28, %v796_v26  ;;  %v802_v39 = vshrl.u32 %v2322_v30, %v796_v26  ;;  %v805_v40 = vshrl.u32 %v2323_v32, %v796_v26 }
  0x93   :  { %v808_v41 = vshrl.u32 %v2324_v34, %v796_v26  ;;  %v811_v46 = vshrl.u32 %v2325_v45, %v796_v26  ;;  %vm816_vm12 = vcmp.lt.s32.totalorder %v794_v16, 4  ;;  %v900_v52 = vsub.s32 32, %v899_v20 }
  0x94   :  { %v800_v48 = vor.u32 %v799_v38, %v798_v27  ;;  %v803_v50 = vor.u32 %v802_v39, %v801_v29  ;;  %v806_v51 = vor.u32 %v805_v40, %v804_v31  ;;  %vm814_vm13 = vcmp.lt.s32.totalorder %v794_v16, 2 }
  0x95   :  { %v809_v53 = vor.u32 %v808_v41, %v807_v33  ;;  %v812_v54 = vor.u32 %v811_v46, %v810_v35  ;;  %v902_v55 = vshll.u32 %v2320_v23, %v899_v20  ;;  %v905_v1 = vshll.u32 %v2321_v28, %v899_v20 }
  0x96   :  { %v817_v56 = vsel %vm813_vm10, %v797_v37, %v800_v48  ;;  %v818_v57 = vsel %vm816_vm12, %v806_v51, 2102212464  ;;  %v821_v58 = vsel %vm813_vm10, %v800_v48, %v803_v50  ;;  %v825_v61 = vsel %vm813_vm10, %v803_v50, %v806_v51 }
  0x97   :  { %v819_v62 = vsel %vm815_vm11, %v803_v50, %v818_v57  ;;  %v822_v63 = vsel %vm816_vm12, %v809_v53, 920167782  ;;  %v826_v0 = vsel %vm816_vm12, %v812_v54, 1326507024  ;;  %v901_v4 = vshrl.u32 %v2320_v23, %v900_v52 }
  0x98   :  { %v823_v2 = vsel %vm815_vm11, %v806_v51, %v822_v63  ;;  %v827_v3 = vsel %vm815_vm11, %v809_v53, %v826_v0  ;;  %v903_v5 = vshrl.u32 %v2321_v28, %v900_v52  ;;  %v820_v6 = vsel %vm814_vm13, %v817_v56, %v819_v62 }
  0x99   :  { %v824_v8 = vsel %vm814_vm13, %v821_v58, %v823_v2  ;;  %v828_v10 = vsel %vm814_vm13, %v825_v61, %v827_v3  ;;  %v906_v13 = vshrl.u32 %v2322_v30, %v900_v52  ;;  %v908_v33 = vshll.u32 %v2322_v30, %v899_v20 }
  0x9a   :  { %v2549_v17 = vmul.u32.u64.low %v2511_v14, %v828_v10  ;;  %v2550_v18 = vmul.u32.u64.high %v2511_v14, %v828_v10, %v2549_v17  ;;  %v2553_v26 = vmul.u32.u64.low %v2511_v14, %v824_v8  ;;  %v2554_v27 = vmul.u32.u64.high %v2511_v14, %v824_v8, %v2553_v26 }
  0x9b   :  { %v904_v29 = vor.u32 %v903_v5, %v902_v55  ;;  %v907_v31 = vor.u32 %v906_v13, %v905_v1  ;;  %v909_v35 = vshrl.u32 %v2323_v32, %v900_v52  ;;  %v911_v16 = vshll.u32 %v2323_v32, %v899_v20 }
  0x9c   :  { %v912_v37 = vshrl.u32 %v2324_v34, %v900_v52  ;;  %v914_v38 = vshll.u32 %v2324_v34, %v899_v20  ;;  %v915_v39 = vshrl.u32 %v2325_v45, %v900_v52  ;;  %v836_v40 = vmul.u32 %v2511_v14, %v820_v6 }
  0x9d   :  { %v910_v41 = vor.u32 %v909_v35, %v908_v33  ;;  %vm917_vm14 = vcmp.lt.s32.totalorder %v2515_v19, 1  ;;  %vm918_vm15 = vcmp.lt.s32.totalorder %v2515_v19, 2  ;;  %vm838_vm7 = vc.u32 %v2550_v18, %v2553_v26 }
  0x9e   :  { %v839_v46 = vadd.s32 1, %v2554_v27  ;;  %v913_v48 = vor.u32 %v912_v37, %v911_v16  ;;  %vm919_vm8 = vcmp.lt.s32.totalorder %v2515_v19, 3  ;;  %v916_v50 = vor.u32 %v915_v39, %v914_v38 }
  0x9f   :  { %vm920_vm9 = vcmp.lt.s32.totalorder %v2515_v19, 4  ;;  %v921_v20 = vsel %vm917_vm14, %v901_v4, %v904_v29  ;;  %v925_v51 = vsel %vm917_vm14, %v904_v29, %v907_v31  ;;  %v929_v54 = vsel %vm917_vm14, %v907_v31, %v910_v41 }
  0xa0   :  { %v840_v14 = vsel %vm838_vm7, %v839_v46, %v2554_v27  ;;  %v922_v52 = vsel %vm920_vm9, %v910_v41, 2102212464  ;;  %v926_v53 = vsel %vm920_vm9, %v913_v48, 920167782  ;;  %v930_v58 = vsel %vm920_vm9, %v916_v50, 1326507024 }
  0xa1   :  { %v841_v55 = vadd.s32 %v840_v14, %v836_v40  ;;  %v923_v56 = vsel %vm919_vm8, %v907_v31, %v922_v52  ;;  %v927_v57 = vsel %vm919_vm8, %v910_v41, %v926_v53  ;;  %v931_v63 = vsel %vm919_vm8, %v913_v48, %v930_v58 }
  0xa2   :  { %v924_v61 = vsel %vm918_vm15, %v921_v20, %v923_v56  ;;  %v928_v62 = vsel %vm918_vm15, %v925_v51, %v927_v57  ;;  %v378_v0 = vshrl.u32 %v2526_v36, 5  ;;  %v932_v2 = vsel %vm918_vm15, %v929_v54, %v931_v63 }
  0xa3   :  { %v842_v1 = vadd.s32 536870912, %v841_v55  ;;  %v2580_v3 = vmul.u32.u64.low %v2513_v15, %v928_v62  ;;  %v2581_v4 = vmul.u32.u64.high %v2513_v15, %v928_v62, %v2580_v3  ;;  %v379_v8 = vand.u32 31, %v2526_v36 }
  0xa4   :  { %v2585_v5 = vmul.u32.u64.low %v2513_v15, %v932_v2  ;;  %v2586_v6 = vmul.u32.u64.high %v2513_v15, %v932_v2, %v2585_v5  ;;  %v2591_v10 = vshll.u32 %v373_v21, 8  ;;  %v940_v19 = vmul.u32 %v2513_v15, %v924_v61 }
  0xa5   :  { %v2593_v13 = vshrl.u32 %v842_v1, 30  ;;  %vm397_vm10 = vcmp.lt.s32.totalorder %v378_v0, 1  ;;  %v2136_v17 = vadd.s32 4294967169, %v2518_v24  ;;  %v380_v27 = vsub.s32 32, %v379_v8 }
  0xa6   :  { %v382_v29 = vshll.u32 %v2320_v23, %v379_v8  ;;  %v385_v31 = vshll.u32 %v2321_v28, %v379_v8  ;;  %vm399_vm11 = vcmp.lt.s32.totalorder %v378_v0, 3  ;;  %v943_v36 = vadd.s32 1, %v2581_v4 }
  0xa7   :  { %3361 = vst [vmem:[#allocation3_spill] sm:$0xff] %v2593_v13  ;;  %v844_v33 = vshll.u32 %v2593_v13, 30  ;;  %v388_v7 = vshll.u32 %v2322_v30, %v379_v8  ;;  %v391_v21 = vshll.u32 %v2323_v32, %v379_v8  ;;  %vm942_vm12 = vc.u32 %v2586_v6, %v2580_v3 }
  0xa8   :  { %v381_v15 = vshrl.u32 %v2320_v23, %v380_v27  ;;  %v383_v24 = vshrl.u32 %v2321_v28, %v380_v27  ;;  %v394_v35 = vshll.u32 %v2324_v34, %v379_v8  ;;  %v944_v37 = vsel %vm942_vm12, %v943_v36, %v2581_v4 }
  0xa9   :  { %v2608_v16 = vsub.s32 %v841_v55, %v844_v33  ;;  %v386_v38 = vshrl.u32 %v2322_v30, %v380_v27  ;;  %v389_v39 = vshrl.u32 %v2323_v32, %v380_v27  ;;  %v945_v40 = vadd.s32 %v944_v37, %v940_v19 }
  0xaa   :  { %v384_v41 = vor.u32 %v383_v24, %v382_v29  ;;  %v392_v46 = vshrl.u32 %v2324_v34, %v380_v27  ;;  %v395_v48 = vshrl.u32 %v2325_v45, %v380_v27  ;;  %vm400_vm13 = vcmp.lt.s32.totalorder %v378_v0, 4 }
  0xab   :  { %v847_v50 = vsub.s32 0, %v2608_v16  ;;  %v387_v20 = vor.u32 %v386_v38, %v385_v31  ;;  %v390_v51 = vor.u32 %v389_v39, %v388_v7  ;;  %v946_v14 = vadd.s32 536870912, %v945_v40  ;;  %v352_v31 = vpop.permute.xlu0 %351 }
  0xac   :  { %v393_v52 = vor.u32 %v392_v46, %v391_v21  ;;  %v396_v53 = vor.u32 %v395_v48, %v394_v35  ;;  %v401_v54 = vsel %vm397_vm10, %v381_v15, %v384_v41  ;;  %vm398_vm14 = vcmp.lt.s32.totalorder %v378_v0, 2 }
  0xad   :  { %v2149_v55 = vmin.u32 %v847_v50, %v2608_v16  ;;  %v402_v56 = vsel %vm400_vm13, %v390_v51, 2102212464  ;;  %v405_v57 = vsel %vm397_vm10, %v384_v41, %v387_v20  ;;  %v409_v58 = vsel %vm397_vm10, %v387_v20, %v390_v51 }
  0xae   :  { %v2620_v61 = vshrl.u32 %v946_v14, 30  ;;  %v403_v62 = vsel %vm399_vm11, %v387_v20, %v402_v56  ;;  %v406_v63 = vsel %vm400_vm13, %v393_v52, 920167782  ;;  %v410_v1 = vsel %vm400_vm13, %v396_v53, 1326507024 }
  0xaf   :  { %v849_v2 = vclz %v2149_v55  ;;  %v407_v4 = vsel %vm399_vm11, %v390_v51, %v406_v63  ;;  %v411_v5 = vsel %vm399_vm11, %v393_v52, %v410_v1  ;;  %v476_v29 = vand.u32 8388607, %v469_v11 }
  0xb0   :  { %v948_v8 = vshll.u32 %v2620_v61, 30  ;;  %v408_v19 = vsel %vm398_vm14, %v405_v57, %v407_v4  ;;  %v412_v27 = vsel %vm398_vm14, %v409_v58, %v411_v5  ;;  %v404_v36 = vsel %vm398_vm14, %v401_v54, %v403_v62 }
  0xb1   :  { %v2150_v33 = vadd.s32 4294967294, %v849_v2  ;;  %v2629_v7 = vmul.u32.u64.low %v2591_v10, %v412_v27  ;;  %v2630_v21 = vmul.u32.u64.high %v2591_v10, %v412_v27, %v2629_v7  ;;  %v479_v35 = vadd.s32 1, %v2136_v17 }
  0xb2   :  { %v2632_v15 = vsub.s32 %v945_v40, %v948_v8  ;;  %v2635_v24 = vmul.u32.u64.low %v2591_v10, %v408_v19  ;;  %v2636_v0 = vmul.u32.u64.high %v2591_v10, %v408_v19, %v2635_v24  ;;  %v837_v37 = vadd.s32 %v2553_v26, %v2550_v18 }
  0xb3   :  { %vm2151_vm15 = vcmp.lt.s32.totalorder %v2150_v33, 0  ;;  %v336_v38 = vsel %vm281_vm6, %v2505_v9, %v316_v25  ;;  %v2646_v39 = vmul.f32 %v352_v31, %v2509_v12  ;;  %v477_v46 = vor.u32 8388608, %v476_v29 }
  0xb4   :  { %v852_v40 = vsel %vm2151_vm15, 0, %v2150_v33  ;;  %v951_v41 = vsub.s32 0, %v2632_v15  ;;  %vm480_vm7 = vcmp.gt.s32.totalorder %v479_v35, 0  ;;  %v941_v17 = vadd.s32 %v2580_v3, %v2586_v6 }
  0xb5   :  { %v853_v48 = vsub.s32 32, %v852_v40  ;;  %v857_v50 = vsub.s32 4294967266, %v852_v40  ;;  %v420_v18 = vmul.u32 %v2591_v10, %v404_v36  ;;  %vm422_vm8 = vc.u32 %v2630_v21, %v2635_v24 }
  0xb6   :  { %v2153_v22 = vmin.u32 %v951_v41, %v2632_v15  ;;  %v423_v25 = vadd.s32 1, %v2636_v0  ;;  %v481_v9 = vsel %vm480_vm7, %v479_v35, 0  ;;  %v854_v12 = vshll.u32 %v2608_v16, %v852_v40 }
  0xb7   :  { %v855_v26 = vshrl.u32 %v837_v37, %v853_v48  ;;  %v858_v20 = vadd.s32 127, %v857_v50  ;;  %v483_v51 = vand.u32 31, %v481_v9  ;;  %v2658_v53 = vshll.u32 %v477_v46, 8 }
  0xb8   :  { %v953_v14 = vclz %v2153_v22  ;;  %v424_v52 = vsel %vm422_vm8, %v423_v25, %v2636_v0  ;;  %v2660_v3 = vmul.f32 %v352_v31, %v336_v38  ;;  %v2662_v57 = vshrl.u32 %v481_v9, 5 }
  0xb9   :  { %v856_v6 = vor.u32 %v855_v26, %v854_v12  ;;  %v859_v10 = vshll.u32 %v858_v20, 23  ;;  %v425_v54 = vadd.s32 %v424_v52, %v420_v18  ;;  %v484_v55 = vsub.s32 32, %v483_v51 }
  0xba   :  { %v2154_v56 = vadd.s32 4294967294, %v953_v14  ;;  %v3350_v58 = vand.u32 2147483647, %v2646_v39  ;;  %v576_v16 = vand.u32 2139095040, %v2646_v39  ;;  %vm3346_vm9 = vcmp.lt.s32.totalorder %v2472_v42, 0 }
  0xbb   :  { %v860_v62 = vor.u32 4788187, %v859_v10  ;;  %v426_v63 = vadd.s32 536870912, %v425_v54  ;;  %v486_v1 = vshll.u32 %v2320_v23, %v483_v51  ;;  %v489_v2 = vshll.u32 %v2321_v28, %v483_v51 }
  0xbc   :  { %v863_v4 = vcvt.s32.f32 %v856_v6  ;;  %vm2155_vm10 = vcmp.lt.s32.totalorder %v2154_v56, 0  ;;  %v487_v5 = vshrl.u32 %v2321_v28, %v484_v55  ;;  %v492_v8 = vshll.u32 %v2322_v30, %v483_v51 }
  0xbd   :  { %v861_v19 = vand.u32 2147483647, %v860_v62  ;;  %v956_v27 = vsel %vm2155_vm10, 0, %v2154_v56  ;;  %v2671_v29 = vshrl.u32 %v426_v63, 30  ;;  %v493_v31 = vshrl.u32 %v2323_v32, %v484_v55 }
  0xbe   :  { %vm2676_vm11 = vcmp.le.f32.partialorder %v781_v47, 0.7853982  ;;  %v3362_v33 = vmov 0  ;;  %v957_v36 = vsub.s32 32, %v956_v27  ;;  %v961_v7 = vsub.s32 4294967266, %v956_v27 }
  0xbf   :  { %v3363_v33 = vsel %vm2676_vm11, 4294967295, %v3362_v33  ;;  %v485_v0 = vshrl.u32 %v2320_v23, %v484_v55  ;;  %v490_v35 = vshrl.u32 %v2322_v30, %v484_v55  ;;  %v864_v37 = vmul.f32 %v863_v4, %v861_v19 }
  0xc0   :  { %3364 = vst [vmem:[#allocation4_spill] sm:$0xff] %v3363_v33  ;;  %v958_v38 = vshll.u32 %v2632_v15, %v956_v27  ;;  %v428_v40 = vshll.u32 %v2671_v29, 30  ;;  %v495_v41 = vshll.u32 %v2323_v32, %v483_v51  ;;  %v959_v46 = vshrl.u32 %v941_v17, %v957_v36 }
  0xc1   :  { %v962_v48 = vadd.s32 127, %v961_v7  ;;  %v488_v50 = vor.u32 %v487_v5, %v486_v1  ;;  %v496_v47 = vshrl.u32 %v2324_v34, %v484_v55  ;;  %v865_v18 = vxor.u32 2147483648, %v864_v37 }
  0xc2   :  { %v2686_v22 = vsub.s32 %v425_v54, %v428_v40  ;;  %v494_v25 = vor.u32 %v493_v31, %v492_v8  ;;  %v499_v9 = vshrl.u32 %v2325_v45, %v484_v55  ;;  %v960_v12 = vor.u32 %v959_v46, %v958_v38 }
  0xc3   :  { %v963_v26 = vshll.u32 %v962_v48, 23  ;;  %v491_v20 = vor.u32 %v490_v35, %v489_v2  ;;  %v498_v15 = vshll.u32 %v2324_v34, %v483_v51  ;;  %vm3348_vm12 = vcmp.lt.s32.totalorder %v2474_v43, 0 }
  0xc4   :  { %v431_v14 = vsub.s32 0, %v2686_v22  ;;  %v497_v17 = vor.u32 %v496_v47, %v495_v41  ;;  %vm501_vm13 = vcmp.lt.s32.totalorder %v2662_v57, 1  ;;  %vm502_vm14 = vcmp.lt.s32.totalorder %v2662_v57, 2 }
  0xc5   :  { %v866_v52 = vsel %vm3346_vm9, %v865_v18, %v864_v37  ;;  %vm2698_vm15 = vcmp.le.f32.partialorder %v885_v49, 0.7853982  ;;  %v3365_v6 = vmov 0  ;;  %v964_v10 = vor.u32 4788187, %v963_v26 }
  0xc6   :  { %v3366_v6 = vsel %vm2698_vm15, 4294967295, %v3365_v6  ;;  %v500_v51 = vor.u32 %v499_v9, %v498_v15  ;;  %vm504_vm7 = vcmp.lt.s32.totalorder %v2662_v57, 4  ;;  %v2133_v54 = vmin.u32 %v431_v14, %v2686_v22 }
  0xc7   :  { %3367 = vst [vmem:[#allocation5_spill] sm:$0xff] %v3366_v6  ;;  %vm503_vm8 = vcmp.lt.s32.totalorder %v2662_v57, 3  ;;  %v505_v55 = vsel %vm501_vm13, %v485_v0, %v488_v50  ;;  %v506_v56 = vsel %vm504_vm7, %v494_v25, 2102212464  ;;  %v965_v62 = vand.u32 2147483647, %v964_v10 }
  0xc8   :  { %v967_v63 = vcvt.s32.f32 %v960_v12  ;;  %v507_v49 = vsel %vm503_vm8, %v491_v20, %v506_v56  ;;  %v509_v1 = vsel %vm501_vm13, %v488_v50, %v491_v20  ;;  %v869_v2 = vsel %vm2676_vm11, %v2472_v42, %v866_v52 }
  0xc9   :  { %v433_v4 = vclz %v2133_v54  ;;  %v510_v5 = vsel %vm504_vm7, %v497_v17, 920167782  ;;  %v513_v8 = vsel %vm501_vm13, %v491_v20, %v494_v25  ;;  %v508_v27 = vsel %vm502_vm14, %v505_v55, %v507_v49 }
  0xca   :  { %v968_v19 = vmul.f32 %v967_v63, %v965_v62  ;;  %v511_v31 = vsel %vm503_vm8, %v494_v25, %v510_v5  ;;  %v514_v36 = vsel %vm504_vm7, %v500_v51, 1326507024  ;;  %v577_v37 = vshrl.u32 %v576_v16, 23 }
  0xcb   :  { %v2134_v7 = vadd.s32 4294967294, %v433_v4  ;;  %v512_v0 = vsel %vm502_vm14, %v509_v1, %v511_v31  ;;  %v515_v35 = vsel %vm503_vm8, %v497_v17, %v514_v36  ;;  %v421_v16 = vadd.s32 %v2635_v24, %v2630_v21 }
  0xcc   :  { %v969_v38 = vxor.u32 2147483648, %v968_v19  ;;  %v516_v40 = vsel %vm502_vm14, %v513_v8, %v515_v35  ;;  %v2735_v41 = vmul.u32.u64.low %v2658_v53, %v512_v0  ;;  %v2736_v46 = vmul.u32.u64.high %v2658_v53, %v512_v0, %v2735_v41 }
  0xcd   :  { %vm2135_vm10 = vcmp.lt.s32.totalorder %v2134_v7, 0  ;;  %v2739_v48 = vmul.u32.u64.low %v2658_v53, %v516_v40  ;;  %v2740_v50 = vmul.u32.u64.high %v2658_v53, %v516_v40, %v2739_v48  ;;  %v2140_v47 = vadd.s32 4294967169, %v577_v37 }
  0xce   :  { %v970_v18 = vsel %vm3348_vm12, %v969_v38, %v968_v19  ;;  %v436_v25 = vsel %vm2135_vm10, 0, %v2134_v7  ;;  %v2748_v57 = vand.u32 8388607, %v3350_v58  ;;  %2287 = vcosq.f32 %v869_v2 }
  0xcf   :  { %v973_v9 = vsel %vm2698_vm15, %v2474_v43, %v970_v18  ;;  %v437_v12 = vsub.s32 32, %v436_v25  ;;  %v441_v26 = vsub.s32 4294967266, %v436_v25  ;;  %2289 = vsinq.f32 %v869_v2 }
  0xd0   :  { %v524_v20 = vmul.u32 %v2658_v53, %v508_v27  ;;  %v527_v15 = vadd.s32 1, %v2736_v46  ;;  %v583_v14 = vadd.s32 1, %v2140_v47  ;;  %v438_v21 = vshll.u32 %v2686_v22, %v436_v25 }
  0xd1   :  { %v439_v24 = vshrl.u32 %v421_v16, %v437_v12  ;;  %v442_v17 = vadd.s32 127, %v441_v26  ;;  %v3347_v52 = vand.u32 2147483647, %v2660_v3  ;;  %2291 = vcosq.f32 %v973_v9 }
  0xd2   :  { %vm526_vm13 = vc.u32 %v2740_v50, %v2735_v41  ;;  %v581_v10 = vor.u32 8388608, %v2748_v57  ;;  %vm584_vm14 = vcmp.gt.s32.totalorder %v583_v14, 0  ;;  %2293 = vsinq.f32 %v973_v9 }
  0xd3   :  { %v440_v51 = vor.u32 %v439_v24, %v438_v21  ;;  %v443_v54 = vshll.u32 %v442_v17, 23  ;;  %v528_v55 = vsel %vm526_vm13, %v527_v15, %v2736_v46  ;;  %v585_v53 = vsel %vm584_vm14, %v583_v14, 0 }
  0xd4   :  { %vm3349_vm7 = vcmp.lt.s32.totalorder %v2476_v44, 0  ;;  %v2762_v22 = vadd.s32 %v2735_v41, %v2740_v50  ;;  %v529_v56 = vadd.s32 %v528_v55, %v524_v20  ;;  %v587_v62 = vand.u32 31, %v585_v53 }
  0xd5   :  { %vm2766_vm8 = vcmp.le.f32.partialorder %v365_v60, 0.7853982  ;;  %v444_v49 = vor.u32 4788187, %v443_v54  ;;  %v447_v1 = vcvt.s32.f32 %v440_v51  ;;  %v586_v2 = vshrl.u32 %v585_v53, 5 }
  0xd6   :  { %v680_v4 = vand.u32 2139095040, %v2660_v3  ;;  %v530_v5 = vadd.s32 536870912, %v529_v56  ;;  %v588_v8 = vsub.s32 32, %v587_v62  ;;  %v590_v19 = vshll.u32 %v2320_v23, %v587_v62 }
  0xd7   :  { %v2774_v27 = vand.u32 8388607, %v3347_v52  ;;  %v445_v31 = vand.u32 2147483647, %v444_v49  ;;  %v593_v36 = vshll.u32 %v2321_v28, %v587_v62  ;;  %v596_v60 = vshll.u32 %v2322_v30, %v587_v62 }
  0xd8   :  { %v599_v7 = vshll.u32 %v2323_v32, %v587_v62  ;;  %v2779_v0 = vshrl.u32 %v530_v5, 30  ;;  %v591_v35 = vshrl.u32 %v2321_v28, %v588_v8  ;;  %v594_v37 = vshrl.u32 %v2322_v30, %v588_v8  ;;  %v2784_v40 = vpop.eup %2287 }
  0xd9   :  { %v602_v38 = vshll.u32 %v2324_v34, %v587_v62  ;;  %3370 = vst [vmem:[#allocation6_spill] sm:$0xff] %v2784_v40  ;;  %v448_v41 = vmul.f32 %v447_v1, %v445_v31  ;;  %v597_v46 = vshrl.u32 %v2323_v32, %v588_v8  ;;  %v600_v48 = vshrl.u32 %v2324_v34, %v588_v8  ;;  %v2789_v47 = vpop.eup %2289 }
  0xda   :  { %v603_v50 = vshrl.u32 %v2325_v45, %v588_v8  ;;  %3371 = vst [vmem:[#allocation7_spill] sm:$0xff] %v2789_v47  ;;  %v532_v18 = vshll.u32 %v2779_v0, 30  ;;  %v589_v16 = vshrl.u32 %v2320_v23, %v588_v8  ;;  %v592_v25 = vor.u32 %v591_v35, %v590_v19  ;;  %v36_v8 = vld [vmem:[%s3340_s0 + $0x8] sm:$0xff] }
  0xdb   :  { %v595_v57 = vor.u32 %v594_v37, %v593_v36  ;;  %v449_v9 = vxor.u32 2147483648, %v448_v41  ;;  %v598_v12 = vor.u32 %v597_v46, %v596_v60  ;;  %v601_v26 = vor.u32 %v600_v48, %v599_v7  ;;  %v2793_v20 = vpop.eup %2291  ;;  %v38_v60 = vld [vmem:[%s3340_s0 + $0x18] sm:$0xff]  ;;  %v35_v7 = vld [vmem:[%s3340_s0] sm:$0xff] }
  0xdc   :  { %vm605_vm10 = vcmp.lt.s32.totalorder %v586_v2, 1  ;;  %3372 = vst [vmem:[#allocation8_spill] sm:$0xff] %v2793_v20  ;;  %v2795_v15 = vsub.s32 %v529_v56, %v532_v18  ;;  %v604_v14 = vor.u32 %v603_v50, %v602_v38  ;;  %vm607_vm13 = vcmp.lt.s32.totalorder %v586_v2, 3  ;;  %v2802_v54 = vpop.eup %2293 }
  0xdd   :  { %vm608_vm14 = vcmp.lt.s32.totalorder %v586_v2, 4  ;;  %v450_v21 = vsel %vm3349_vm7, %v449_v9, %v448_v41  ;;  %v609_v24 = vsel %vm605_vm10, %v589_v16, %v592_v25  ;;  %v613_v51 = vsel %vm605_vm10, %v592_v25, %v595_v57  ;;  %v2837_v16 = vld [vmem:[%s3341_s1] sm:$0x77] }
  0xde   :  { %v610_v17 = vsel %vm608_vm14, %v598_v12, 2102212464  ;;  %v453_v55 = vsel %vm2766_vm8, %v2476_v44, %v450_v21  ;;  %v535_v53 = vsub.s32 0, %v2795_v15  ;;  %v614_v62 = vsel %vm608_vm14, %v601_v26, 920167782 }
  0xdf   :  { %v611_v56 = vsel %vm607_vm13, %v595_v57, %v610_v17  ;;  %vm606_vm9 = vcmp.lt.s32.totalorder %v586_v2, 2  ;;  %v615_v49 = vsel %vm607_vm13, %v598_v12, %v614_v62  ;;  %v617_v1 = vsel %vm605_vm10, %v595_v57, %v598_v12 }
  0xe0   :  { %v621_v5 = vshll.u32 %v581_v10, 8  ;;  %2295 = vcosq.f32 %v453_v55  ;;  %v2137_v19 = vmin.u32 %v535_v53, %v2795_v15  ;;  %v616_v31 = vsel %vm606_vm9, %v613_v51, %v615_v49  ;;  %v37_v10 = vld [vmem:[%s3340_s0 + $0x10] sm:$0xff] }
  0xe1   :  { %v618_v36 = vsel %vm608_vm14, %v604_v14, 1326507024  ;;  %v612_v35 = vsel %vm606_vm9, %v609_v24, %v611_v56  ;;  %v681_v50 = vshrl.u32 %v680_v4, 23  ;;  %v685_v18 = vor.u32 8388608, %v2774_v27 }
  0xe2   :  { %v619_v37 = vsel %vm607_vm13, %v601_v26, %v618_v36  ;;  %v2829_v38 = vmul.u32.u64.low %v621_v5, %v616_v31  ;;  %v2830_v41 = vmul.u32.u64.high %v621_v5, %v616_v31, %v2829_v38  ;;  %v537_v46 = vclz %v2137_v19 }
  0xe3   :  { %v620_v48 = vsel %vm606_vm9, %v617_v1, %v619_v37  ;;  %v2199_v9 = vpack.c.bf16 %v38_v60, %v36_v8  ;;  %v2201_v12 = vpack.c.bf16 %v37_v10, %v35_v7  ;;  %2297 = vsinq.f32 %v453_v55 }
  0xe4   :  { %v2839_v25 = vmul.u32.u64.low %v621_v5, %v620_v48  ;;  %v2840_v57 = vmul.u32.u64.high %v621_v5, %v620_v48, %v2839_v25  ;;  %v2138_v26 = vadd.s32 4294967294, %v537_v46  ;;  %v628_v14 = vmul.u32 %v621_v5, %v612_v35 }
  0xe5   :  { %v2144_v21 = vadd.s32 4294967169, %v681_v50  ;;  %v631_v2 = vadd.s32 1, %v2830_v41  ;;  %v2843_v24 = vshll.u32 %v685_v18, 8  ;;  %2200 = vmatprep.subr.bf16.mxu0 %v2199_v9  ;;  %v2847_v4 = vmul.f32 %v2837_v16, %v2837_v16 }
  0xe6   :  { %v2126_v27 = vrot.slane %v2837_v16, 9  ;;  %vm2139_vm9 = vcmp.lt.s32.totalorder %v2138_v26, 0  ;;  %2202 = vmatpush1.bf16.msra.mxu0 %v2201_v12  ;;  %v47_v51 = vrot.slane %v2837_v16, 6  ;;  %v2852_v55 = vmul.f32 -0.48860252, %v2837_v16 }
  0xe7   :  { %v687_v17 = vadd.s32 1, %v2144_v21  ;;  %v540_v53 = vsel %vm2139_vm9, 0, %v2138_v26  ;;  %vm630_vm10 = vc.u32 %v2840_v57, %v2829_v38  ;;  %v2856_v56 = vmul.f32 0.48860252, %v2837_v16 }
  0xe8   :  { %v2859_v62 = vmul.f32 0.9461747, %v2847_v4  ;;  %v541_v49 = vsub.s32 32, %v540_v53  ;;  %v545_v1 = vsub.s32 4294967266, %v540_v53  ;;  %v2862_v5 = vadd.s32 %v2829_v38, %v2840_v57 }
  0xe9   :  { %v632_v8 = vsel %vm630_vm10, %v631_v2, %v2830_v41  ;;  %v542_v19 = vshll.u32 %v2795_v15, %v540_v53  ;;  %vm688_vm13 = vcmp.gt.s32.totalorder %v687_v17, 0  ;;  %v2867_v36 = vmul.f32 %v2126_v27, %v2837_v16 }
  0xea   :  { %v633_v31 = vadd.s32 %v632_v8, %v628_v14  ;;  %v2869_v60 = vpop.eup %2295  ;;  %v543_v7 = vshrl.u32 %v2762_v22, %v541_v49  ;;  %v546_v10 = vadd.s32 127, %v545_v1  ;;  %v689_v35 = vsel %vm688_vm13, %v687_v17, 0 }
  0xeb   :  { %v2872_v37 = vrot.slane %v47_v51, 4  ;;  %v691_v38 = vand.u32 31, %v689_v35  ;;  %v2875_v48 = vmul.f32 1.0925485, %v2867_v36  ;;  %v2878_v15 = vmul.f32 -1.0925485, %v2867_v36 }
  0xec   :  { %v634_v46 = vadd.s32 536870912, %v633_v31  ;;  %v544_v41 = vor.u32 %v543_v7, %v542_v19  ;;  %v547_v50 = vshll.u32 %v546_v10, 23  ;;  %v690_v18 = vshrl.u32 %v689_v35, 5 }
  0xed   :  { %v59_v25 = vrot.slane %v2847_v4, 5  ;;  %vm471_vm14 = vcmp.lt.s32.totalorder %v2493_v59, 0  ;;  %v692_v57 = vsub.s32 32, %v691_v38  ;;  %v694_v9 = vshll.u32 %v2320_v23, %v691_v38  ;;  %v2886_v26 = vpop.eup %2297 }
  0xee   :  { %v2882_v22 = vshrl.u32 %v634_v46, 30  ;;  %v697_v12 = vshll.u32 %v2321_v28, %v691_v38  ;;  %vm2890_vm9 = vcmp.le.f32.partialorder %v469_v11, 0.7853982  ;;  %v548_v21 = vor.u32 4788187, %v547_v50 }
  0xef   :  { %v551_v2 = vcvt.s32.f32 %v544_v41  ;;  %v700_v27 = vshll.u32 %v2322_v30, %v691_v38  ;;  %v703_v17 = vshll.u32 %v2323_v32, %v691_v38  ;;  %v693_v53 = vshrl.u32 %v2320_v23, %v692_v57 }
  0xf0   :  { %v636_v51 = vshll.u32 %v2882_v22, 30  ;;  %v695_v49 = vshrl.u32 %v2321_v28, %v692_v57  ;;  %v698_v1 = vshrl.u32 %v2322_v30, %v692_v57  ;;  %v549_v8 = vand.u32 2147483647, %v548_v21 }
  0xf1   :  { %v701_v11 = vshrl.u32 %v2323_v32, %v692_v57  ;;  %v704_v19 = vshrl.u32 %v2324_v34, %v692_v57  ;;  %v706_v7 = vshll.u32 %v2324_v34, %v691_v38  ;;  %v707_v41 = vshrl.u32 %v2325_v45, %v692_v57 }
  0xf2   :  { %v2903_v10 = vsub.s32 %v633_v31, %v636_v51  ;;  %v696_v35 = vor.u32 %v695_v49, %v694_v9  ;;  %v699_v46 = vor.u32 %v698_v1, %v697_v12  ;;  %v552_v50 = vmul.f32 %v551_v2, %v549_v8 }
  0xf3   :  { %v702_v52 = vor.u32 %v701_v11, %v700_v27  ;;  %v705_v23 = vor.u32 %v704_v19, %v703_v17  ;;  %vm709_vm10 = vcmp.lt.s32.totalorder %v690_v18, 1  ;;  %v708_v30 = vor.u32 %v707_v41, %v706_v7 }
  0xf4   :  { %v639_v28 = vsub.s32 0, %v2903_v10  ;;  %vm710_vm13 = vcmp.lt.s32.totalorder %v690_v18, 2  ;;  %vm711_vm12 = vcmp.lt.s32.totalorder %v690_v18, 3  ;;  %v553_v32 = vxor.u32 2147483648, %v552_v50 }
  0xf5   :  { %vm712_vm7 = vcmp.lt.s32.totalorder %v690_v18, 4  ;;  %v713_v21 = vsel %vm709_vm10, %v693_v53, %v696_v35  ;;  %v717_v58 = vsel %vm709_vm10, %v696_v35, %v699_v46  ;;  %v721_v9 = vsel %vm709_vm10, %v699_v46, %v702_v52 }
  0xf6   :  { %v2141_v34 = vmin.u32 %v639_v28, %v2903_v10  ;;  %v714_v31 = vsel %vm712_vm7, %v702_v52, 2102212464  ;;  %v718_v38 = vsel %vm712_vm7, %v705_v23, 920167782  ;;  %v554_v45 = vsel %vm471_vm14, %v553_v32, %v552_v50 }
  0xf7   :  { %v715_v57 = vsel %vm711_vm12, %v699_v46, %v714_v31  ;;  %v719_v12 = vsel %vm711_vm12, %v702_v52, %v718_v38  ;;  %v722_v2 = vsel %vm712_vm7, %v708_v30, 1326507024  ;;  %v557_v27 = vsel %vm2890_vm9, %v2493_v59, %v554_v45 }
  0xf8   :  { %v641_v17 = vclz %v2141_v34  ;;  %v720_v51 = vsel %vm710_vm13, %v717_v58, %v719_v12  ;;  %v50_v53 = vmul.f32 %v2872_v37, %v2837_v16  ;;  %v716_v49 = vsel %vm710_vm13, %v713_v21, %v715_v57 }
  0xf9   :  { %v723_v1 = vsel %vm711_vm12, %v705_v23, %v722_v2  ;;  %v2921_v8 = vmul.u32.u64.low %v2843_v24, %v720_v51  ;;  %v2922_v11 = vmul.u32.u64.high %v2843_v24, %v720_v51, %v2921_v8  ;;  %2299 = vcosq.f32 %v557_v27 }
  0xfa   :  { %v2142_v52 = vadd.s32 4294967294, %v641_v17  ;;  %v724_v19 = vsel %vm710_vm13, %v721_v9, %v723_v1  ;;  %v2926_v7 = vadd.f32 -0.31539157, %v2859_v62  ;;  %2301 = vsinq.f32 %v557_v27 }
  0xfb   :  { %v2929_v58 = vmul.u32.u64.low %v2843_v24, %v724_v19  ;;  %v2930_v35 = vmul.u32.u64.high %v2843_v24, %v724_v19, %v2929_v58  ;;  %v60_v46 = vrot.slane %v59_v25, 4  ;;  %v732_v41 = vmul.u32 %v2843_v24, %v716_v49 }
  0xfc   :  { %vm2143_vm7 = vcmp.lt.s32.totalorder %v2142_v52, 0  ;;  %v2933_v50 = vmul.f32 -1.0925485, %v50_v53  ;;  %v65_v23 = vmul.f32 3.0, %v2847_v4  ;;  %v735_v18 = vadd.s32 1, %v2922_v11 }
  0xfd   :  { %v644_v28 = vsel %vm2143_vm7, 0, %v2142_v52  ;;  %v62_v30 = vsub.f32 %v2847_v4, %v60_v46  ;;  %v64_v62 = vmul.f32 -0.5900436, %v2837_v16  ;;  %v71_v31 = vmul.f32 2.8906114, %v2867_v36 }
  0xfe   :  { %v645_v32 = vsub.s32 32, %v644_v28  ;;  %v649_v21 = vsub.s32 4294967266, %v644_v28  ;;  %v66_v34 = vsub.f32 %v65_v23, %v60_v46  ;;  %v646_v25 = vshll.u32 %v2903_v10, %v644_v28 }
  0xff   :  { %v2942_v24 = vadd.s32 %v2921_v8, %v2930_v35  ;;  %vm734_vm12 = vc.u32 %v2930_v35, %v2921_v8  ;;  %v73_v38 = vmul.f32 0.4570458, %v2837_v16  ;;  %v2948_v27 = vmul.f32 0.54627424, %v62_v30 }
 0x100   :  { %v647_v9 = vshrl.u32 %v2862_v5, %v645_v32  ;;  %v650_v45 = vadd.s32 127, %v649_v21  ;;  %v736_v57 = vsel %vm734_vm12, %v735_v18, %v2922_v11  ;;  %v68_v12 = vrot.slane %v66_v34, 7 }
 0x101   :  { %v737_v2 = vadd.s32 %v736_v57, %v732_v41  ;;  %v74_v36 = vmul.f32 5.0, %v2847_v4  ;;  %v81_v10 = vmul.f32 0.37317634, %v2837_v16  ;;  %v88_v53 = vmul.f32 1.4453057, %v2837_v16 }
 0x102   :  { %v648_v17 = vor.u32 %v647_v9, %v646_v25  ;;  %v651_v51 = vshll.u32 %v650_v45, 23  ;;  %v90_v49 = vrot.slane %v62_v30, 6  ;;  %vm575_vm10 = vcmp.lt.s32.totalorder %v2646_v39, 0 }
 0x103   :  { %v738_v1 = vadd.s32 536870912, %v737_v2  ;;  %v75_v5 = vsub.f32 1.0, %v74_v36  ;;  %v2129_v8 = vadd.f32 -3.0, %v74_v36  ;;  %v2131_v52 = vrot.slane %v65_v23, 9  ;;  %v2954_v11 = vpop.eup %2299 }
 0x104   :  { %v3375_v19 = vand.u32 2147483647, %v2646_v39  ;;  %v652_v35 = vor.u32 4788187, %v651_v51  ;;  %v2962_v46 = vmul.f32 %v68_v12, %v64_v62  ;;  %v2965_v16 = vmul.f32 %v71_v31, %v2872_v37  ;;  %v2967_v28 = vpop.eup %2301 }
 0x105   :  { %v100_v41 = vlaneseq  ;;  %v655_v18 = vcvt.s32.f32 %v648_v17  ;;  %v2969_v30 = vshrl.u32 %v738_v1, 30  ;;  %v2128_v23 = vrot.slane %v75_v5, 9 }
 0x106   :  { %vm2958_vm13 = vcmp.le.f32.partialorder %v3375_v19, 0.7853982  ;;  %v2130_v32 = vrot.slane %v75_v5, 10  ;;  %v653_v21 = vand.u32 2147483647, %v652_v35  ;;  %v2971_v34 = vmul.f32 %v90_v49, %v88_v53 }
 0x107   :  { %v97_v25 = vsub.f32 %v2847_v4, %v2131_v52  ;;  %v101_v9 = vshrl.u32 %v100_v41, 7  ;;  %v740_v45 = vshll.u32 %v2969_v30, 30  ;;  %v2975_v57 = vmul.f32 %v2128_v23, %v73_v38 }
 0x108   :  { %v2977_v37 = vmul.f32 %v2129_v8, %v81_v10  ;;  %v656_v12 = vmul.f32 %v655_v18, %v653_v21  ;;  %v2980_v36 = vmul.f32 %v2130_v32, %v73_v38  ;;  %vm679_vm12 = vcmp.lt.s32.totalorder %v2660_v3, 0 }
 0x109   :  { %v2982_v17 = vsub.s32 1, %v101_v9  ;;  %v106_v51 = vsub.s32 5, %v101_v9  ;;  %v2984_v1 = vsub.s32 %v737_v2, %v740_v45  ;;  %v2986_v53 = vmul.f32 %v97_v25, %v64_v62 }
 0x10a   :  { %v117_v4 = vsub.s32 6, %v101_v9  ;;  %v127_v49 = vsub.s32 4, %v101_v9  ;;  %v657_v5 = vxor.u32 2147483648, %v656_v12  ;;  %v2989_v19 = vsub.s32 0, %v101_v9 }
 0x10b   :  { %v107_v52 = vrot.slane %v2852_v55, %v106_v51  ;;  %v150_v10 = vrot.slane %v2878_v15, %v106_v51  ;;  %v743_v8 = vsub.s32 0, %v2984_v1  ;;  %v194_v45 = vrot.slane %v2962_v46, %v106_v51 }
 0x10c   :  { %v118_v38 = vrot.slane %v2856_v56, %v117_v4  ;;  %v128_v35 = vrot.slane %v2852_v55, %v127_v49  ;;  %v658_v62 = vsel %vm575_vm10, %v657_v5, %v656_v12  ;;  %v139_v41 = vrot.slane %v2875_v48, %v127_v49 }
 0x10d   :  { %v161_v18 = vrot.slane %v2926_v7, %v117_v4  ;;  %v172_v23 = vrot.slane %v2933_v50, %v127_v49  ;;  %v661_v32 = vsel %vm2958_vm13, %v2646_v39, %v658_v62  ;;  %v2145_v21 = vmin.u32 %v743_v8, %v2984_v1 }
 0x10e   :  { %v183_v25 = vrot.slane %v2948_v27, %v127_v49  ;;  %2303 = vcosq.f32 %v661_v32  ;;  %v179_v12 = vrot.slane %v2948_v27, %v2989_v19  ;;  %v205_v5 = vrot.slane %v2965_v16, %v127_v49 }
 0x10f   :  { %v216_v31 = vrot.slane %v2975_v57, %v106_v51  ;;  %2305 = vsinq.f32 %v661_v32  ;;  %v745_v2 = vclz %v2145_v21  ;;  %v201_v33 = vrot.slane %v2965_v16, %v2989_v19 }
 0x110   :  { %v227_v62 = vrot.slane %v2977_v37, %v117_v4  ;;  %v238_v8 = vrot.slane %v2980_v36, %v127_v49  ;;  %v249_v42 = vrot.slane %v2971_v34, %v117_v4  ;;  %v265_v40 = vsel %vm263_vm4, 0.2820948, %v107_v52 }
 0x111   :  { %v285_v47 = vsel %vm263_vm4, %v183_v25, %v194_v45  ;;  %v2146_v27 = vadd.s32 4294967294, %v745_v2  ;;  %v260_v13 = vrot.slane %v2986_v53, %v127_v49  ;;  %v268_v51 = vsel %vm266_vm0, %v265_v40, %v118_v38 }
 0x112   :  { %v287_v32 = vsel %vm266_vm0, %v285_v47, %v205_v5  ;;  %v271_v21 = vsel %vm269_vm1, %v268_v51, %v128_v35  ;;  %v103_v6 = vrot.slane %v2852_v55, %v2982_v17  ;;  %v113_v20 = vsub.s32 2, %v101_v9 }
 0x113   :  { %v289_v16 = vsel %vm269_vm1, %v287_v32, %v216_v31  ;;  %vm2147_vm7 = vcmp.lt.s32.totalorder %v2146_v27, 0  ;;  %v274_v4 = vsel %vm272_vm5, %v271_v21, %v139_v41  ;;  %v124_v49 = vrot.slane %v2852_v55, %v2989_v19 }
 0x114   :  { %v291_v52 = vsel %vm272_vm5, %v289_v16, %v227_v62  ;;  %v748_v2 = vsel %vm2147_vm7, 0, %v2146_v27  ;;  %v277_v40 = vsel %vm275_vm2, %v274_v4, %v150_v10  ;;  %v135_v31 = vrot.slane %v2875_v48, %v2989_v19 }
 0x115   :  { %v293_v47 = vsel %vm275_vm2, %v291_v52, %v238_v8  ;;  %v749_v38 = vsub.s32 32, %v748_v2  ;;  %v753_v35 = vsub.s32 4294967266, %v748_v2  ;;  %v280_v9 = vsel %vm278_vm3, %v277_v40, %v161_v18 }
 0x116   :  { %v114_v25 = vrot.slane %v2856_v56, %v113_v20  ;;  %v750_v41 = vshll.u32 %v2984_v1, %v748_v2  ;;  %v283_v45 = vsel %vm281_vm6, %v280_v9, %v172_v23  ;;  %v295_v55 = vsel %vm278_vm3, %v293_v47, %v249_v42 }
 0x117   :  { %v146_v10 = vrot.slane %v2878_v15, %v2982_v17  ;;  %v751_v5 = vshrl.u32 %v2942_v24, %v749_v38  ;;  %v754_v48 = vadd.s32 127, %v753_v35  ;;  %v297_v62 = vsel %vm281_vm6, %v295_v55, %v260_v13 }
 0x118   :  { %v157_v18 = vrot.slane %v2926_v7, %v113_v20  ;;  %v3045_v8 = vpop.eup %2303  ;;  %v2203_v56 = vpack.c.bf16 %v297_v62, %v283_v45  ;;  %v168_v1 = vrot.slane %v2933_v50, %v2989_v19  ;;  %v212_v42 = vrot.slane %v2975_v57, %v2982_v17 }
 0x119   :  { %v223_v15 = vrot.slane %v2977_v37, %v113_v20  ;;  %v3052_v23 = vpop.eup %2305  ;;  %v752_v27 = vor.u32 %v751_v5, %v750_v41  ;;  %v755_v24 = vshll.u32 %v754_v48, 23  ;;  %v234_v13 = vrot.slane %v2980_v36, %v2989_v19 }
 0x11a   :  { %v245_v7 = vrot.slane %v2971_v34, %v113_v20  ;;  %2204 = vmatprep.subr.bf16.mxu0 %v2203_v56  ;;  %v256_v51 = vrot.slane %v2986_v53, %v2989_v19  ;;  %v264_v50 = vsel %vm263_vm4, 0.2820948, %v103_v6  ;;  %v3378_v57 = vrot.slane %v2962_v46, %v2982_v17 }
 0x11b   :  { %v3379_v32 = vsub.s32 4, %v2779_v0  ;;  %v756_v36 = vor.u32 4788187, %v755_v24  ;;  %v267_v20 = vsel %vm266_vm0, %v264_v50, %v114_v25  ;;  %v566_v53 = vxor.u32 2147483648, %v2967_v28 }
 0x11c   :  { %v284_v37 = vsel %vm263_vm4, %v179_v12, %v3378_v57  ;;  %v759_v19 = vcvt.s32.f32 %v752_v27  ;;  %v270_v6 = vsel %vm269_vm1, %v267_v20, %v124_v49  ;;  %v569_v2 = vxor.u32 2147483648, %v2954_v11 }
 0x11d   :  { %v556_v21 = vsel %vm471_vm14, %v3379_v32, %v2779_v0  ;;  %v286_v34 = vsel %vm266_vm0, %v284_v37, %v201_v33  ;;  %v757_v12 = vand.u32 2147483647, %v756_v36  ;;  %v273_v16 = vsel %vm272_vm5, %v270_v6, %v135_v31 }
 0x11e   :  { %v288_v46 = vsel %vm269_vm1, %v286_v34, %v212_v42  ;;  %v3076_v17 = vsel %vm2890_vm9, 0, %v556_v21  ;;  %v276_v33 = vsel %vm275_vm2, %v273_v16, %v146_v10  ;;  %v763_v49 = vsub.s32 4, %v2969_v30 }
 0x11f   :  { %v290_v0 = vsel %vm272_vm5, %v288_v46, %v223_v15  ;;  %v562_v4 = vadd.s32 3, %v3076_v17  ;;  %v760_v40 = vmul.f32 %v759_v19, %v757_v12  ;;  %v279_v14 = vsel %vm278_vm3, %v276_v33, %v157_v18  ;;  %v3383_v46 = vld [vmem:[#allocation8_spill] sm:$0xff]  ;;  %v3385_v33 = vld [vmem:[#allocation3_spill] sm:$0xff] }
 0x120   :  { %v292_v52 = vsel %vm275_vm2, %v290_v0, %v234_v13  ;;  %v282_v31 = vsel %vm281_vm6, %v279_v14, %v168_v1  ;;  %v764_v9 = vsel %vm679_vm12, %v763_v49, %v2969_v30  ;;  %v451_v25 = vsub.s32 4, %v2671_v29  ;;  %v3386_v49 = vld [vmem:[#allocation7_spill] sm:$0xff]  ;;  %v3387_v14 = vld [vmem:[#allocation6_spill] sm:$0xff] }
 0x121   :  { %v294_v47 = vsel %vm278_vm3, %v292_v52, %v245_v7  ;;  %v563_v38 = vand.u32 3, %v562_v4  ;;  %v3380_v41 = vand.u32 2147483647, %v2660_v3  ;;  %v761_v45 = vxor.u32 2147483648, %v760_v40 }
 0x122   :  { %v296_v35 = vsel %vm281_vm6, %v294_v47, %v256_v51  ;;  %vm3381_vm3 = vcmp.lt.s32.totalorder %v2476_v44, 0  ;;  %v462_v27 = vxor.u32 2147483648, %v2886_v26  ;;  %v465_v13 = vxor.u32 2147483648, %v2869_v60 }
 0x123   :  { %vm678_vm0 = vcmp.le.f32.partialorder %v3380_v41, 0.7853982  ;;  %v2205_v55 = vpack.c.bf16 %v296_v35, %v282_v31  ;;  %vm565_vm1 = vcmp.eq.s32.totalorder %v563_v38, 0  ;;  %vm568_vm2 = vcmp.eq.s32.totalorder %v563_v38, 2 }
 0x124   :  { %v567_v10 = vsel %vm565_vm1, %v2954_v11, %v566_v53  ;;  %v3098_v5 = vsel %vm678_vm0, 0, %v764_v9  ;;  %v452_v48 = vsel %vm3381_vm3, %v451_v25, %v2671_v29  ;;  %v762_v30 = vsel %vm679_vm12, %v761_v45, %v760_v40 }
 0x125   :  { %2206 = vmatpush1.bf16.msra.mxu0 %v2205_v55  ;;  %v570_v62 = vsel %vm568_vm2, %v569_v2, %v2967_v28  ;;  %v770_v18 = vadd.s32 3, %v3098_v5  ;;  %v3111_v56 = vsel %vm2766_vm8, 0, %v452_v48  ;;  %v765_v1 = vsel %vm678_vm0, %v2660_v3, %v762_v30  ;;  %v3388_v48 = vld [vmem:[#allocation2_spill] sm:$0xff] }
 0x126   :  { %vm564_vm4 = vcmp.lt.s32.totalorder %v563_v38, 2  ;;  %v458_v42 = vadd.s32 3, %v3111_v56  ;;  %2307 = vcosq.f32 %v765_v1  ;;  %v659_v7 = vsub.s32 4, %v2882_v22 }
 0x127   :  { %v571_v29 = vsel %vm564_vm4, %v567_v10, %v570_v62  ;;  %v3115_v15 = vand.u32 3, %v770_v18  ;;  %2309 = vsinq.f32 %v765_v1  ;;  %vm561_vm5 = vweird.f32 %v2493_v59 }
 0x128   :  { %v459_v24 = vand.u32 3, %v458_v42  ;;  %vm457_vm6 = vweird.f32 %v2476_v44  ;;  %v3124_v63 = vsel %vm561_vm5, nan, %v571_v29  ;;  %v660_v51 = vsel %vm575_vm10, %v659_v7, %v2882_v22 }
 0x129   :  { %vm776_vm9 = vcmp.eq.s32.totalorder %v3115_v15, 2  ;;  %v662_v37 = vsel %vm2958_vm13, 0, %v660_v51  ;;  %vm773_vm12 = vcmp.eq.s32.totalorder %v3115_v15, 0  ;;  %vm665_vm0 = vweird.f32 %v2646_v39  ;;  %v1608_v39 = vld [vmem:[%s3342_s4 + $0x8] sm:$0xff] }
 0x12a   :  { %vm461_vm8 = vcmp.eq.s32.totalorder %v459_v24, 0  ;;  %vm464_vm14 = vcmp.eq.s32.totalorder %v459_v24, 2  ;;  %vm460_vm7 = vcmp.lt.s32.totalorder %v459_v24, 2  ;;  %v666_v22 = vadd.s32 3, %v662_v37 }
 0x12b   :  { %v463_v50 = vsel %vm461_vm8, %v2869_v60, %v462_v27  ;;  %v466_v57 = vsel %vm464_vm14, %v465_v13, %v2886_v26  ;;  %v971_v21 = vsub.s32 4, %v2620_v61  ;;  %vm772_vm10 = vcmp.lt.s32.totalorder %v3115_v15, 2 }
 0x12c   :  { %v467_v32 = vsel %vm460_vm7, %v463_v50, %v466_v57  ;;  %v670_v20 = vxor.u32 2147483648, %v3052_v23  ;;  %v673_v34 = vxor.u32 2147483648, %v3045_v8  ;;  %v982_v58 = vxor.u32 2147483648, %v2802_v54 }
 0x12d   :  { %v468_v36 = vsel %vm457_vm6, nan, %v467_v32  ;;  %vm769_vm13 = vweird.f32 %v2660_v3  ;;  %v667_v19 = vand.u32 3, %v666_v22  ;;  %vm3382_vm1 = vcmp.lt.s32.totalorder %v2474_v43, 0 }
 0x12e   :  { %v972_v6 = vsel %vm3382_vm1, %v971_v21, %v2620_v61  ;;  %v985_v12 = vxor.u32 2147483648, %v3383_v46  ;;  %v1185_v16 = vand.u32 3, %v3076_v17  ;;  %vm977_vm2 = vweird.f32 %v2474_v43 }
 0x12f   :  { %v974_v4 = vsel %vm2698_vm15, 0, %v972_v6  ;;  %v867_v52 = vsub.s32 4, %v3385_v33  ;;  %v878_v40 = vxor.u32 2147483648, %v3386_v49  ;;  %v881_v47 = vxor.u32 2147483648, %v3387_v14 }
 0x130   :  { %vm668_vm3 = vcmp.lt.s32.totalorder %v667_v19, 2  ;;  %vm669_vm4 = vcmp.eq.s32.totalorder %v667_v19, 0  ;;  %vm672_vm8 = vcmp.eq.s32.totalorder %v667_v19, 2  ;;  %v978_v38 = vadd.s32 3, %v974_v4  ;;  %v2308_v61 = vpop.eup %2307 }
 0x131   :  { %v671_v17 = vsel %vm669_vm4, %v3045_v8, %v670_v20  ;;  %v674_v31 = vsel %vm672_vm8, %v673_v34, %v3052_v23  ;;  %vm1186_vm15 = vcmp.lt.s32.totalorder %v1185_v16, 2  ;;  %vm1187_vm14 = vcmp.eq.s32.totalorder %v1185_v16, 0  ;;  %v2310_v35 = vpop.eup %2309 }
 0x132   :  { %v777_v9 = vxor.u32 2147483648, %v2308_v61  ;;  %v675_v25 = vsel %vm668_vm3, %v671_v17, %v674_v31  ;;  %v979_v41 = vand.u32 3, %v978_v38  ;;  %v1189_v45 = vsel %vm1187_vm14, %v2954_v11, %v566_v53 }
 0x133   :  { %v774_v55 = vxor.u32 2147483648, %v2310_v35  ;;  %v676_v10 = vsel %vm665_vm0, nan, %v675_v25  ;;  %vm1190_vm7 = vcmp.eq.s32.totalorder %v1185_v16, 2  ;;  %vm3389_vm1 = vcmp.lt.s32.totalorder %v3388_v48, 0  ;;  %v1613_v25 = vld [vmem:[%s3342_s4 + $0x30] sm:$0xff] }
 0x134   :  { %v868_v30 = vsel %vm3389_vm1, %v867_v52, %v3385_v33  ;;  %v778_v62 = vsel %vm776_vm9, %v777_v9, %v2310_v35  ;;  %v2209_v18 = vpack.c.bf16 %v676_v10, %v468_v36  ;;  %vm980_vm4 = vcmp.lt.s32.totalorder %v979_v41, 2  ;;  %v1626_v10 = vpop.permute.xlu1 %1625 }
 0x135   :  { %vm981_vm3 = vcmp.eq.s32.totalorder %v979_v41, 0  ;;  %v775_v1 = vsel %vm773_vm12, %v2308_v61, %v774_v55  ;;  %vm984_vm8 = vcmp.eq.s32.totalorder %v979_v41, 2  ;;  %v1192_v42 = vsel %vm1190_vm7, %v569_v2, %v2967_v28  ;;  %v1614_v41 = vld [vmem:[%s3342_s4 + $0x38] sm:$0xff] }
 0x136   :  { %v983_v53 = vsel %vm981_vm3, %v3383_v46, %v982_v58  ;;  %vm873_vm14 = vweird.f32 %v3388_v48  ;;  %v779_v29 = vsel %vm772_vm10, %v775_v1, %v778_v62  ;;  %v986_v24 = vsel %vm984_vm8, %v985_v12, %v2802_v54 }
 0x137   :  { %v1193_v7 = vsel %vm1186_vm15, %v1189_v45, %v1192_v42  ;;  %v870_v50 = vsel %vm2676_vm11, 0, %v868_v30  ;;  %v780_v57 = vsel %vm769_vm13, nan, %v779_v29  ;;  %v987_v32 = vsel %vm980_vm4, %v983_v53, %v986_v24  ;;  %v1631_v30 = vpop.permute.xlu0 %1630 }
 0x138   :  { %v1194_v11 = vsel %vm561_vm5, nan, %v1193_v7  ;;  %v874_v28 = vadd.s32 3, %v870_v50  ;;  %v2207_v2 = vpack.c.bf16 %v780_v57, %v3124_v63  ;;  %v988_v15 = vsel %vm977_vm2, nan, %v987_v32 }
 0x139   :  { %v1082_v22 = vand.u32 3, %v3111_v56  ;;  %v1391_v21 = vand.u32 3, %v3098_v5  ;;  %v2211_v36 = vpack.c.bf16 %v1194_v11, %v988_v15  ;;  %v1597_v6 = vand.u32 3, %v974_v4  ;;  %v1636_v11 = vpop.permute.xlu1 %1635 }
 0x13a   :  { %v875_v19 = vand.u32 3, %v874_v28  ;;  %v1288_v16 = vand.u32 3, %v662_v37  ;;  %2208 = vmatprep.subr.bf16.mxu0 %v2207_v2 }
 0x13b   :  { %vm1083_vm11 = vcmp.lt.s32.totalorder %v1082_v22, 2  ;;  %vm1084_vm9 = vcmp.eq.s32.totalorder %v1082_v22, 0  ;;  %vm1087_vm12 = vcmp.eq.s32.totalorder %v1082_v22, 2  ;;  %vm1392_vm10 = vcmp.lt.s32.totalorder %v1391_v21, 2  ;;  %2210 = vmatpush1.bf16.msra.mxu0 %v2209_v18  ;;  %v1641_v15 = vpop.permute.xlu0 %1640 }
 0x13c   :  { %vm876_vm5 = vcmp.lt.s32.totalorder %v875_v19, 2  ;;  %vm877_vm15 = vcmp.eq.s32.totalorder %v875_v19, 0  ;;  %vm880_vm7 = vcmp.eq.s32.totalorder %v875_v19, 2  ;;  %v1086_v59 = vsel %vm1084_vm9, %v2869_v60, %v462_v27  ;;  %2212 = vmatprep.subr.bf16.mxu0 %v2211_v36 }
 0x13d   :  { %v879_v5 = vsel %vm877_vm15, %v3387_v14, %v878_v40  ;;  %v882_v56 = vsel %vm880_vm7, %v881_v47, %v3386_v49  ;;  %v1089_v63 = vsel %vm1087_vm12, %v465_v13, %v2886_v26  ;;  %vm1393_vm1 = vcmp.eq.s32.totalorder %v1391_v21, 0 }
 0x13e   :  { %v883_v37 = vsel %vm876_vm5, %v879_v5, %v882_v56  ;;  %v1090_v0 = vsel %vm1083_vm11, %v1086_v59, %v1089_v63  ;;  %v1395_v4 = vsel %vm1393_vm1, %v2308_v61, %v774_v55  ;;  %vm1396_vm4 = vcmp.eq.s32.totalorder %v1391_v21, 2 }
 0x13f   :  { %v884_v27 = vsel %vm873_vm14, nan, %v883_v37  ;;  %v1091_v33 = vsel %vm457_vm6, nan, %v1090_v0  ;;  %v1398_v52 = vsel %vm1396_vm4, %v777_v9, %v2310_v35  ;;  %vm1598_vm3 = vcmp.lt.s32.totalorder %v1597_v6, 2  ;;  %v1612_v9 = vld [vmem:[%s3342_s4 + $0x28] sm:$0xff] }
 0x140   :  { %v2213_v38 = vpack.c.bf16 %v1091_v33, %v884_v27  ;;  %v1399_v17 = vsel %vm1392_vm10, %v1395_v4, %v1398_v52  ;;  %vm1599_vm8 = vcmp.eq.s32.totalorder %v1597_v6, 0  ;;  %vm1602_vm9 = vcmp.eq.s32.totalorder %v1597_v6, 2  ;;  %v1646_v4 = vpop.permute.xlu1 %1645  ;;  %v1651_v52 = vpop.permute.xlu0 %1650 }
 0x141   :  { %v1400_v60 = vsel %vm769_vm13, nan, %v1399_v17  ;;  %v1601_v26 = vsel %vm1599_vm8, %v3383_v46, %v982_v58  ;;  %v1604_v13 = vsel %vm1602_vm9, %v985_v12, %v2802_v54  ;;  %vm1289_vm11 = vcmp.lt.s32.totalorder %v1288_v16, 2 }
 0x142   :  { %2214 = vmatpush1.bf16.msra.mxu0 %v2213_v38  ;;  %v1605_v44 = vsel %vm1598_vm3, %v1601_v26, %v1604_v13  ;;  %vm1290_vm6 = vcmp.eq.s32.totalorder %v1288_v16, 0  ;;  %vm1293_vm12 = vcmp.eq.s32.totalorder %v1288_v16, 2  ;;  %v1494_v61 = vand.u32 3, %v870_v50 }
 0x143   :  { %v1606_v31 = vsel %vm977_vm2, nan, %v1605_v44  ;;  %v1292_v3 = vsel %vm1290_vm6, %v3045_v8, %v670_v20  ;;  %v1295_v58 = vsel %vm1293_vm12, %v673_v34, %v3052_v23  ;;  %v2326_v54 = vmov 0.0  }
 0x144   :  { %v2215_v35 = vpack.c.bf16 %v1606_v31, %v1400_v60  ;;  %v1296_v46 = vsel %vm1289_vm11, %v1292_v3, %v1295_v58  ;;  %vm1496_vm13 = vcmp.eq.s32.totalorder %v1494_v61, 0  ;;  %1752 = vmatprep.mubr.f32.mxu0 %v2326_v54  ;;  %1962 = vmatprep.mubr.f32.mxu1 %v2326_v54  ;;  %vm1499_vm2 = vcmp.eq.s32.totalorder %v1494_v61, 2 }
 0x145   :  { %v1498_v43 = vsel %vm1496_vm13, %v3387_v14, %v878_v40  ;;  %v1297_v20 = vsel %vm665_vm0, nan, %v1296_v46  ;;  %vm1495_vm10 = vcmp.lt.s32.totalorder %v1494_v61, 2  ;;  %v1501_v8 = vsel %vm1499_vm2, %v881_v47, %v3386_v49  ;;  %v1607_v40 = vld [vmem:[%s3342_s4] sm:$0xff]  ;;  %v1609_v49 = vld [vmem:[%s3342_s4 + $0x10] sm:$0xff]  ;;  %v1610_v14 = vld [vmem:[%s3342_s4 + $0x18] sm:$0xff] }
 0x146   :  { %2216 = vmatprep.subr.bf16.mxu0 %v2215_v35  ;;  %v1502_v23 = vsel %vm1495_vm10, %v1498_v43, %v1501_v8  ;;  %vm1663_vm5 = vcmask 654336   ;;  %v1611_v47 = vld [vmem:[%s3342_s4 + $0x20] sm:$0xff]  ;;  %v1656_v43 = vpop.permute.xlu1 %1655  ;;  %vm1873_vm0 = vcmask 523264  }
 0x147   :  { %v1503_v34 = vsel %vm873_vm14, nan, %v1502_v23  ;;  %v1661_v23 = vpop.permute.xlu0 %1660 }
 0x148   :  { %v2217_v12 = vpack.c.bf16 %v1503_v34, %v1297_v20 }
 0x14a   :  { %2218 = vmatpush1.bf16.msra.mxu0 %v2217_v12 }
 0x14d   :  { %2180 = vmatmul.mubr.msk.f32.vlgmr.msra.gmra.mrb[0].mxu0 %vm1663_vm5, %v1607_v40 }
 0x14e   :  { %1758 = vmatprep.mubr.f32.mxu0 %v2326_v54 }
 0x151   :  { %2181 = vmatmul.mubr.msk.f32.gmra.mrb[2].mxu0 %vm1663_vm5, %v1608_v39 }
 0x152   :  { %1764 = vmatprep.mubr.f32.mxu0 %v2326_v54 }
 0x155   :  { %2182 = vmatmul.mubr.msk.f32.gmra.mrb[4].mxu0 %vm1663_vm5, %v1609_v49 }
 0x156   :  { %1770 = vmatprep.mubr.f32.mxu0 %v2326_v54 }
 0x159   :  { %2183 = vmatmul.mubr.msk.f32.gmra.mrb[6].mxu0 %vm1663_vm5, %v1610_v14 }
 0x15a   :  { %1776 = vmatprep.mubr.f32.mxu0 %v2326_v54 }
 0x15d   :  { %2184 = vmatmul.mubr.msk.f32.gmra.mrb[8].mxu0 %vm1663_vm5, %v1611_v47 }
 0x15e   :  { %1782 = vmatprep.mubr.f32.mxu0 %v2326_v54 }
 0x161   :  { %2185 = vmatmul.mubr.msk.f32.gmra.mrb[10].mxu0 %vm1663_vm5, %v1612_v9 }
 0x162   :  { %1788 = vmatprep.mubr.f32.mxu0 %v2326_v54 }
 0x165   :  { %2186 = vmatmul.mubr.msk.f32.gmra.mrb[12].mxu0 %vm1663_vm5, %v1613_v25 }
 0x166   :  { %1794 = vmatprep.mubr.f32.mxu0 %v2326_v54 }
 0x169   :  { %2187 = vmatmul.mubr.msk.f32.gmra.mrb[14].mxu0 %vm1663_vm5, %v1614_v41 }
 0x220   :  { %v1754_v45 = vpop.f32.mrb[0].mxu0 }
 0x221   :  { %v1756_v55 = vpop.f32.mrb[1].mxu0  ;;  %v1755_v48 = vadd.f32 %v1754_v45, %v1626_v10 }
 0x222   :  { %v1757_v62 = vadd.f32 %v1756_v55, %v1626_v10  ;;  %v1817_v55 = vld [vmem:[%s3343_s6] sm:$0xff]  ;;  %v1818_v10 = vld [vmem:[%s3343_s6 + $0x8] sm:$0xff] }
 0x223   :  { %v1801_v29 = vmax.f32 %v1755_v48, 0.0  ;;  %v1819_v48 = vld [vmem:[%s3343_s6 + $0x10] sm:$0xff] }
 0x224   :  { %v1760_v18 = vpop.f32.mrb[2].mxu0  ;;  %v1802_v7 = vmax.f32 %v1757_v62, 0.0  ;;  %v1821_v62 = vld [vmem:[%s3343_s6 + $0x20] sm:$0xff] }
 0x225   :  { %v1761_v1 = vadd.f32 %v1760_v18, %v1631_v30  ;;  %v1762_v53 = vpop.f32.mrb[3].mxu0  ;;  %v1822_v18 = vld [vmem:[%s3343_s6 + $0x28] sm:$0xff] }
 0x226   :  { %v1763_v42 = vadd.f32 %v1762_v53, %v1631_v30  ;;  %v1820_v30 = vld [vmem:[%s3343_s6 + $0x18] sm:$0xff] }
 0x227   :  { %v1803_v24 = vmax.f32 %v1761_v1, 0.0  ;;  %v1823_v1 = vld [vmem:[%s3343_s6 + $0x30] sm:$0xff]  ;;  %v1824_v53 = vld [vmem:[%s3343_s6 + $0x38] sm:$0xff] }
 0x228   :  { %v1804_v51 = vmax.f32 %v1763_v42, 0.0  ;;  %v1766_v50 = vpop.f32.mrb[4].mxu0 }
 0x229   :  { %v1768_v57 = vpop.f32.mrb[5].mxu0  ;;  %v2221_v32 = vpack.c.bf16 %v1803_v24, %v1801_v29  ;;  %v1767_v2 = vadd.f32 %v1766_v50, %v1636_v11  ;;  %v1836_v24 = vpop.permute.xlu1 %1835 }
 0x22a   :  { %v2219_v28 = vpack.c.bf16 %v1804_v51, %v1802_v7  ;;  %v1769_v22 = vadd.f32 %v1768_v57, %v1636_v11  ;;  %v1841_v51 = vpop.permute.xlu0 %1840 }
 0x22b   :  { %v1805_v16 = vmax.f32 %v1767_v2, 0.0 }
 0x22c   :  { %v1772_v21 = vpop.f32.mrb[6].mxu0  ;;  %2220 = vmatprep.subr.bf16.mxu1 %v2219_v28  ;;  %v1806_v5 = vmax.f32 %v1769_v22, 0.0 }
 0x22d   :  { %v1773_v36 = vadd.f32 %v1772_v21, %v1641_v15  ;;  %v1774_v19 = vpop.f32.mrb[7].mxu0  ;;  %2222 = vmatpush1.bf16.msra.mxu1 %v2221_v32 }
 0x22e   :  { %v1775_v6 = vadd.f32 %v1774_v19, %v1641_v15 }
 0x22f   :  { %v1807_v59 = vmax.f32 %v1773_v36, 0.0 }
 0x230   :  { %v1808_v56 = vmax.f32 %v1775_v6, 0.0  ;;  %v1778_v63 = vpop.f32.mrb[8].mxu0 }
 0x231   :  { %v2225_v37 = vpack.c.bf16 %v1807_v59, %v1805_v16  ;;  %v1780_v0 = vpop.f32.mrb[9].mxu0  ;;  %v1779_v33 = vadd.f32 %v1778_v63, %v1646_v4  ;;  %v1846_v16 = vpop.permute.xlu1 %1845 }
 0x232   :  { %v2223_v27 = vpack.c.bf16 %v1808_v56, %v1806_v5  ;;  %v1781_v38 = vadd.f32 %v1780_v0, %v1646_v4  ;;  %v1851_v5 = vpop.permute.xlu0 %1850 }
 0x233   :  { %v1809_v44 = vmax.f32 %v1779_v33, 0.0 }
 0x234   :  { %v1784_v17 = vpop.f32.mrb[10].mxu0  ;;  %2224 = vmatprep.subr.bf16.mxu1 %v2223_v27  ;;  %v1810_v31 = vmax.f32 %v1781_v38, 0.0 }
 0x235   :  { %v1785_v60 = vadd.f32 %v1784_v17, %v1651_v52  ;;  %v1786_v26 = vpop.f32.mrb[11].mxu0  ;;  %2226 = vmatpush1.bf16.msra.mxu1 %v2225_v37 }
 0x236   :  { %v1787_v13 = vadd.f32 %v1786_v26, %v1651_v52 }
 0x237   :  { %v1811_v61 = vmax.f32 %v1785_v60, 0.0 }
 0x238   :  { %v1812_v3 = vmax.f32 %v1787_v13, 0.0  ;;  %v1790_v58 = vpop.f32.mrb[12].mxu0  ;;  %v1856_v13 = vpop.permute.xlu1 %1855 }
 0x239   :  { %v2229_v35 = vpack.c.bf16 %v1811_v61, %v1809_v44  ;;  %v1792_v46 = vpop.f32.mrb[13].mxu0  ;;  %v1791_v8 = vadd.f32 %v1790_v58, %v1656_v43 }
 0x23a   :  { %v2227_v20 = vpack.c.bf16 %v1812_v3, %v1810_v31  ;;  %v1793_v34 = vadd.f32 %v1792_v46, %v1656_v43  ;;  %v1861_v31 = vpop.permute.xlu0 %1860 }
 0x23b   :  { %v1813_v14 = vmax.f32 %v1791_v8, 0.0 }
 0x23c   :  { %v1796_v12 = vpop.f32.mrb[14].mxu0  ;;  %2228 = vmatprep.subr.bf16.mxu1 %v2227_v20  ;;  %v1814_v9 = vmax.f32 %v1793_v34, 0.0 }
 0x23d   :  { %v1797_v40 = vadd.f32 %v1796_v12, %v1661_v23  ;;  %v1798_v39 = vpop.f32.mrb[15].mxu0  ;;  %2230 = vmatpush1.bf16.msra.mxu1 %v2229_v35 }
 0x23e   :  { %v1799_v49 = vadd.f32 %v1798_v39, %v1661_v23 }
 0x23f   :  { %v1815_v47 = vmax.f32 %v1797_v40, 0.0 }
 0x240   :  { %v1816_v25 = vmax.f32 %v1799_v49, 0.0  ;;  %v1866_v49 = vpop.permute.xlu1 %1865 }
 0x241   :  { %v2233_v41 = vpack.c.bf16 %v1815_v47, %v1813_v14 }
 0x242   :  { %v2231_v45 = vpack.c.bf16 %v1816_v25, %v1814_v9  ;;  %v1871_v9 = vpop.permute.xlu0 %1870 }
 0x244   :  { %2232 = vmatprep.subr.bf16.mxu1 %v2231_v45 }
 0x245   :  { %2234 = vmatpush1.bf16.msra.mxu1 %v2233_v41 }
 0x248   :  { %2188 = vmatmul.mubr.msk.f32.vlgmr.msra.gmra.mrb[0].mxu1 %vm1873_vm0, %v1817_v55 }
 0x249   :  { %1968 = vmatprep.mubr.f32.mxu1 %v2326_v54 }
 0x24c   :  { %2189 = vmatmul.mubr.msk.f32.gmra.mrb[2].mxu1 %vm1873_vm0, %v1818_v10 }
 0x24d   :  { %1974 = vmatprep.mubr.f32.mxu1 %v2326_v54 }
 0x250   :  { %2190 = vmatmul.mubr.msk.f32.gmra.mrb[4].mxu1 %vm1873_vm0, %v1819_v48 }
 0x251   :  { %1980 = vmatprep.mubr.f32.mxu1 %v2326_v54 }
 0x254   :  { %2191 = vmatmul.mubr.msk.f32.gmra.mrb[6].mxu1 %vm1873_vm0, %v1820_v30 }
 0x255   :  { %1986 = vmatprep.mubr.f32.mxu1 %v2326_v54 }
 0x258   :  { %2192 = vmatmul.mubr.msk.f32.gmra.mrb[8].mxu1 %vm1873_vm0, %v1821_v62 }
 0x259   :  { %1992 = vmatprep.mubr.f32.mxu1 %v2326_v54 }
 0x25c   :  { %2193 = vmatmul.mubr.msk.f32.gmra.mrb[10].mxu1 %vm1873_vm0, %v1822_v18 }
 0x25d   :  { %1998 = vmatprep.mubr.f32.mxu1 %v2326_v54 }
 0x260   :  { %2194 = vmatmul.mubr.msk.f32.gmra.mrb[12].mxu1 %vm1873_vm0, %v1823_v1 }
 0x261   :  { %2004 = vmatprep.mubr.f32.mxu1 %v2326_v54 }
 0x264   :  { %2195 = vmatmul.mubr.msk.f32.gmra.mrb[14].mxu1 %vm1873_vm0, %v1824_v53 }
 0x265   :  { %2101 = vmatprep.mubr.f32.mxu1 %v2326_v54 }
 0x31b   :  { %v1964_v42 = vpop.f32.mrb[0].mxu1 }
 0x31c   :  { %v1966_v29 = vpop.f32.mrb[1].mxu1  ;;  %v1965_v7 = vadd.f32 %v1964_v42, %v1836_v24  ;;  %v2027_v42 = vld [vmem:[%s3344_s8] sm:$0xff] }
 0x31d   :  { %v1967_v50 = vadd.f32 %v1966_v29, %v1836_v24  ;;  %v2032_v29 = vpop.permute.xlu1 %2031 }
 0x31e   :  { %v2011_v2 = vmax.f32 %v1965_v7, 0.0 }
 0x31f   :  { %v1970_v57 = vpop.f32.mrb[2].mxu1  ;;  %v2012_v22 = vmax.f32 %v1967_v50, 0.0 }
 0x320   :  { %v1971_v32 = vadd.f32 %v1970_v57, %v1841_v51  ;;  %v1972_v11 = vpop.f32.mrb[3].mxu1 }
 0x321   :  { %v1973_v28 = vadd.f32 %v1972_v11, %v1841_v51 }
 0x322   :  { %v2013_v15 = vmax.f32 %v1971_v32, 0.0 }
 0x323   :  { %v2014_v21 = vmax.f32 %v1973_v28, 0.0  ;;  %v1976_v36 = vpop.f32.mrb[4].mxu1 }
 0x324   :  { %v2237_v19 = vpack.c.bf16 %v2013_v15, %v2011_v2  ;;  %v1978_v6 = vpop.f32.mrb[5].mxu1  ;;  %v1977_v54 = vadd.f32 %v1976_v36, %v1846_v16 }
 0x325   :  { %v2235_v59 = vpack.c.bf16 %v2014_v21, %v2012_v22  ;;  %v1979_v56 = vadd.f32 %v1978_v6, %v1846_v16 }
 0x326   :  { %v2015_v27 = vmax.f32 %v1977_v54, 0.0 }
 0x327   :  { %v1982_v63 = vpop.f32.mrb[6].mxu1  ;;  %2236 = vmatprep.subr.bf16.mxu1 %v2235_v59  ;;  %v2016_v52 = vmax.f32 %v1979_v56, 0.0 }
 0x328   :  { %v1983_v37 = vadd.f32 %v1982_v63, %v1851_v5  ;;  %v1984_v0 = vpop.f32.mrb[7].mxu1  ;;  %2238 = vmatpush1.bf16.msra.mxu1 %v2237_v19 }
 0x329   :  { %v1985_v4 = vadd.f32 %v1984_v0, %v1851_v5 }
 0x32a   :  { %v2017_v33 = vmax.f32 %v1983_v37, 0.0 }
 0x32b   :  { %v2018_v38 = vmax.f32 %v1985_v4, 0.0  ;;  %v1988_v17 = vpop.f32.mrb[8].mxu1 }
 0x32c   :  { %v2241_v60 = vpack.c.bf16 %v2017_v33, %v2015_v27  ;;  %v1990_v26 = vpop.f32.mrb[9].mxu1  ;;  %v1989_v61 = vadd.f32 %v1988_v17, %v1856_v13 }
 0x32d   :  { %v2239_v44 = vpack.c.bf16 %v2018_v38, %v2016_v52  ;;  %v1991_v3 = vadd.f32 %v1990_v26, %v1856_v13 }
 0x32e   :  { %v2019_v20 = vmax.f32 %v1989_v61, 0.0 }
 0x32f   :  { %v1994_v58 = vpop.f32.mrb[10].mxu1  ;;  %2240 = vmatprep.subr.bf16.mxu1 %v2239_v44  ;;  %v2020_v23 = vmax.f32 %v1991_v3, 0.0 }
 0x330   :  { %v1995_v35 = vadd.f32 %v1994_v58, %v1861_v31  ;;  %v1996_v46 = vpop.f32.mrb[11].mxu1  ;;  %2242 = vmatpush1.bf16.msra.mxu1 %v2241_v60 }
 0x331   :  { %v1997_v43 = vadd.f32 %v1996_v46, %v1861_v31 }
 0x332   :  { %v2021_v8 = vmax.f32 %v1995_v35, 0.0 }
 0x333   :  { %v2022_v34 = vmax.f32 %v1997_v43, 0.0  ;;  %v2000_v12 = vpop.f32.mrb[12].mxu1 }
 0x334   :  { %v2245_v40 = vpack.c.bf16 %v2021_v8, %v2019_v20  ;;  %v2002_v39 = vpop.f32.mrb[13].mxu1  ;;  %v2001_v47 = vadd.f32 %v2000_v12, %v1866_v49 }
 0x335   :  { %v2243_v14 = vpack.c.bf16 %v2022_v34, %v2020_v23  ;;  %v2003_v25 = vadd.f32 %v2002_v39, %v1866_v49 }
 0x336   :  { %v2023_v48 = vmax.f32 %v2001_v47, 0.0 }
 0x337   :  { %v2006_v41 = vpop.f32.mrb[14].mxu1  ;;  %2244 = vmatprep.subr.bf16.mxu1 %v2243_v14  ;;  %v2024_v62 = vmax.f32 %v2003_v25, 0.0 }
 0x338   :  { %v2007_v45 = vadd.f32 %v2006_v41, %v1871_v9  ;;  %v2008_v55 = vpop.f32.mrb[15].mxu1  ;;  %2246 = vmatpush1.bf16.msra.mxu1 %v2245_v40 }
 0x339   :  { %v2009_v10 = vadd.f32 %v2008_v55, %v1871_v9 }
 0x33a   :  { %v2025_v30 = vmax.f32 %v2007_v45, 0.0 }
 0x33b   :  { %v2026_v18 = vmax.f32 %v2009_v10, 0.0 }
 0x33c   :  { %v2249_v1 = vpack.c.bf16 %v2025_v30, %v2023_v48 }
 0x33d   :  { %v2247_v53 = vpack.c.bf16 %v2026_v18, %v2024_v62 }
 0x33f   :  { %2248 = vmatprep.subr.bf16.mxu1 %v2247_v53 }
 0x340   :  { %2250 = vmatpush1.bf16.msra.mxu1 %v2249_v1 }
 0x343   :  { %2196 = vmatmul.mubr.msk.f32.vlgmr.msra.gmra.mrb[16].mxu1 %vm1873_vm0, %v2027_v42 }
 0x416   :  { %v2103_v24 = vpop.f32.mrb[16].mxu1 }
 0x417   :  { %v2104_v7 = vadd.f32 %v2103_v24, %v2032_v29  ;;  %v2105_v51 = vpop.f32.mrb[17].mxu1 }
 0x418   :  { %v2106_v50 = vadd.f32 %v2105_v51, %v2032_v29 }
 0x419   :  { %v2197_v57 = vmul.f32 -1.442695, %v2104_v7 }
 0x41a   :  { %v2198_v32 = vmul.f32 -1.442695, %v2106_v50 }
 0x41b   :  { %2311 = vpow2.f32 %v2197_v57 }
 0x41c   :  { %2313 = vpow2.f32 %v2198_v32 }
 0x425   :  { %v2312_v11 = vpop.eup %2311 }
 0x426   :  { %v2314_v28 = vpop.eup %2313  ;;  %v2114_v2 = vadd.f32 1.0, %v2312_v11 }
 0x427   :  { %v2115_v15 = vadd.f32 1.0, %v2314_v28 }
 0x428   :  { %2315 = vrcp.f32 %v2114_v2 }
 0x429   :  { %2317 = vrcp.f32 %v2115_v15 }
 0x432   :  { %v2316_v22 = vpop.eup %2315 }
 0x433   :  { %v2318_v21 = vpop.eup %2317  ;;  %2120 = vst [vmem:[%s3345_s10] sm:$0xff] %v2316_v22 }
 0x434   :  { %2121 = vst [vmem:[%s3345_s10 + $0x8] sm:$0xff] %v2318_v21 }

</bundles_post_ra>
